<compile_context>
chip_gen: v5e
topology: v5e:2x2
jax: 0.10.0
libtpu: 0.0.40
codegen_flags: <defaults>
</compile_context>

<pallas_src>
import jax
import jax.numpy as jnp
from jax.experimental import pallas as pl
from jax.experimental.pallas import tpu as pltpu

VOCAB_PAD = 32  # output_dim 30 padded to the next multiple of 8 (sublane aligned)


# ----------------------------------------------------------------------------
# Fused kernel: last-position TCN + full GRU-decoder recurrence + CE loss
# ----------------------------------------------------------------------------
def _fused_kernel(tf_ref,                                   # SMEM (T-1,) i32 (prefetch)
                  xtail_ref, tcn_w_ref, tcn_b_ref,          # TCN tail window + weights
                  trg_oh_ref, emb_ref,
                  wx_ref, wh_ref, wc_ref, fc_wh_ref,
                  b_ih_ref, b_hh_ref, fc_b_ref,
                  loss_ref):
    f32, bf16 = jnp.float32, jnp.bfloat16
    T, B, Cp = trg_oh_ref.shape
    H = wh_ref.shape[0]
    n_steps = T - 1

    # --- TCN block, last output position only: context = ReLU(xtail @ W + b) -----
    ctx = jnp.maximum(
        jnp.dot(xtail_ref[...].astype(bf16), tcn_w_ref[...],
                preferred_element_type=f32) + tcn_b_ref[...], 0.0)        # (B, H) f32

    # --- loop-invariant context contributions (hoisted out of the recurrence) ----
    # wc = [w_ic_r | w_ic_z | w_ic_n | fc_wc]  -> (B, 3H + Cp), computed once.
    cz = jnp.dot(ctx.astype(bf16), wc_ref[...], preferred_element_type=f32)
    gi_c = cz[:, :3 * H] + b_ih_ref[...]        # per-gate ctx term + b_ih   (B, 3H)
    fc_c = cz[:, 3 * H:] + fc_b_ref[...]        # fc ctx term + fc bias      (B, Cp)
    b_hh = b_hh_ref[...]                        # (1, 3H)

    col = jax.lax.broadcasted_iota(jnp.int32, (B, Cp), 1)

    # --- recurrence carries (registers, no scratch) -------------------------------
    h = ctx                                     # hidden = context
    inp_oh = trg_oh_ref[0]                      # input = trg[0]  (one-hot, f32)
    loss = jnp.zeros((1, 1), f32)

    for t in range(n_steps):                    # fully unrolled, static indices
        # embedding gather as one-hot @ table (MXU)
        emb = jnp.dot(inp_oh.astype(bf16), emb_ref[...], preferred_element_type=f32)

        # fused emb-side dot: gates (r|z|n) and fc_we contribution in one 128-lane dot
        xz = jnp.dot(emb.astype(bf16), wx_ref[...], preferred_element_type=f32)
        gi = xz[:, :3 * H] + gi_c                                          # (B, 3H)

        # fused hidden-side gate dot
        gh = jnp.dot(h.astype(bf16), wh_ref[...], preferred_element_type=f32) + b_hh

        # GRU cell (PyTorch semantics; b_hn sits inside gh -> scaled by r)
        r = jax.nn.sigmoid(gi[:, :H] + gh[:, :H])
        z = jax.nn.sigmoid(gi[:, H:2 * H] + gh[:, H:2 * H])
        n = jnp.tanh(gi[:, 2 * H:] + r * gh[:, 2 * H:])
        h = (1.0 - z) * n + z * h

        # fc_out on concat(emb, h_new, ctx): emb/ctx parts already in xz / fc_c
        logits = (xz[:, 3 * H:] + fc_c
                  + jnp.dot(h.astype(bf16), fc_wh_ref[...],
                            preferred_element_type=f32))                   # (B, Cp)

        # cross-entropy partial sum against target row t + 1
        tgt_oh = trg_oh_ref[t + 1]                                         # (B, Cp)
        m = jnp.max(logits, axis=1, keepdims=True)
        lse = jnp.log(jnp.sum(jnp.exp(logits - m), axis=1, keepdims=True)) + m
        picked = jnp.sum(logits * tgt_oh, axis=1, keepdims=True)
        loss = loss + jnp.sum(lse - picked, axis=0, keepdims=True)

        # next input token: teacher forcing vs argmax (first-max tie-break)
        idx = jnp.min(jnp.where(logits == m, col, Cp), axis=1, keepdims=True)
        arg_oh = (col == idx).astype(f32)
        tf = tf_ref[t].astype(f32)                                         # SMEM scalar
        inp_oh = tf * tgt_oh + (1.0 - tf) * arg_oh

    # single write of the mean loss (CrossEntropyLoss over (T-1)*B rows)
    loss_ref[...] = loss * (1.0 / float(n_steps * B))


# ----------------------------------------------------------------------------
# Weight layout prep (hoisted, runs once): transpose / gate-fuse / pad / bf16-cast
# ----------------------------------------------------------------------------
def prepare_params(params, c_pad):
    f32, bf16 = jnp.float32, jnp.bfloat16
    C, E = params["emb"].shape                       # (output_dim, emb_dim)
    H = params["gru_w_hh"].shape[1]
    Cout, Cin, K = params["tcn_w"].shape
    NEG = -1e30

    # TCN conv flattened for the tail im2col:  w_flat[k*Cin + c, o] = w[o, c, k]
    tcn_w = jnp.transpose(params["tcn_w"], (2, 1, 0)).reshape(K * Cin, Cout).astype(bf16)
    tcn_b = params["tcn_b"].reshape(1, Cout).astype(f32)

    # embedding table padded along the vocab (one-hot contraction) axis
    emb_p = jnp.zeros((c_pad, E), f32).at[:C].set(params["emb"]).astype(bf16)

    # nn.GRU weight_ih_l0: (3H, E+H), row blocks (r | z | n); input = cat(embedded, ctx)
    w_ih_t = params["gru_w_ih"].reshape(3, H, E + H).transpose(0, 2, 1)   # (3, E+H, H)
    w_ie = w_ih_t[:, :E, :]                                               # (3, E, H)
    w_ic = w_ih_t[:, E:, :]                                               # (3, H, H)
    w_hh = params["gru_w_hh"].reshape(3, H, H).transpose(0, 2, 1)         # (3, H, H)

    # fc_out (C, E+2H) on cat(embedded, hidden, context); pad output lanes C -> c_pad.
    fc_wt = params["fc_w"].T                                              # (E+2H, C)
    fc_we = jnp.zeros((E, c_pad), f32).at[:, :C].set(fc_wt[:E])
    fc_wh = jnp.zeros((H, c_pad), f32).at[:, :C].set(fc_wt[E:E + H])
    fc_wc = jnp.zeros((H, c_pad), f32).at[:, :C].set(fc_wt[E + H:])
    # padded bias columns get -1e30 so they never win argmax nor contribute to the LSE
    fc_b = jnp.full((1, c_pad), NEG, f32).at[0, :C].set(params["fc_b"])

    # fused lane-axis weights
    wx = jnp.concatenate([w_ie[0], w_ie[1], w_ie[2], fc_we], axis=1).astype(bf16)  # (E, 3H+Cp)
    wc = jnp.concatenate([w_ic[0], w_ic[1], w_ic[2], fc_wc], axis=1).astype(bf16)  # (H, 3H+Cp)
    wh = jnp.concatenate([w_hh[0], w_hh[1], w_hh[2]], axis=1).astype(bf16)         # (H, 3H)

    b_ih = params["gru_b_ih"].reshape(1, 3 * H).astype(f32)
    b_hh = params["gru_b_hh"].reshape(1, 3 * H).astype(f32)

    return dict(tcn_w=tcn_w, tcn_b=tcn_b, emb=emb_p, wx=wx, wh=wh, wc=wc,
                fc_wh=fc_wh.astype(bf16), b_ih=b_ih, b_hh=b_hh, fc_b=fc_b)


# ----------------------------------------------------------------------------
# pallas_call wrapper
# ----------------------------------------------------------------------------
def fused_forward_loss(dp, xtail, trg_onehot, tf_flags):
    operands = [xtail, dp["tcn_w"], dp["tcn_b"], trg_onehot, dp["emb"],
                dp["wx"], dp["wh"], dp["wc"], dp["fc_wh"],
                dp["b_ih"], dp["b_hh"], dp["fc_b"]]

    def full(shape):
        # index_map receives (grid index, scalar-prefetch ref)
        return pl.BlockSpec(shape, lambda i, tf: (0,) * len(shape))

    grid_spec = pltpu.PrefetchScalarGridSpec(
        num_scalar_prefetch=1,                       # teacher-forcing flags -> SMEM
        grid=(1,),                                   # collapsed grid: one invocation
        in_specs=[full(o.shape) for o in operands],
        out_specs=pl.BlockSpec((1, 1), lambda i, tf: (0, 0)),
    )
    loss = pl.pallas_call(
        _fused_kernel,
        out_shape=jax.ShapeDtypeStruct((1, 1), jnp.float32),
        grid_spec=grid_spec,
        compiler_params=pltpu.CompilerParams(dimension_semantics=("arbitrary",)),
    )(tf_flags, *operands)
    return loss[0, 0]


# ----------------------------------------------------------------------------
# Model (parameter init + forward)
# ----------------------------------------------------------------------------
def init_params(key, input_size, output_size, kernel_size=3):
    emb = input_size
    hid = input_size
    ks = jax.random.split(key, 8)
    s = 0.1
    return dict(
        # tcn: Conv1d(input_size -> hid, K=3, pad=1) + ReLU  (representative TCN block)
        tcn_w=jax.random.normal(ks[0], (hid, input_size, kernel_size), jnp.float32) * s,
        tcn_b=jax.random.normal(ks[1], (hid,), jnp.float32) * s,
        # decoder.embedding: (output_dim, emb_dim)
        emb=jax.random.normal(ks[2], (output_size, emb), jnp.float32) * s,
        # decoder.rnn = nn.GRU(emb+hid, hid)
        gru_w_ih=jax.random.normal(ks[3], (3 * hid, emb + hid), jnp.float32) * s,
        gru_w_hh=jax.random.normal(ks[4], (3 * hid, hid), jnp.float32) * s,
        gru_b_ih=jax.random.normal(ks[5], (3 * hid,), jnp.float32) * s,
        gru_b_hh=jax.random.normal(ks[6], (3 * hid,), jnp.float32) * s,
        # decoder.fc_out = nn.Linear(emb + 2*hid, output_dim)
        fc_w=jax.random.normal(ks[7], (output_size, emb + 2 * hid), jnp.float32) * s,
        fc_b=jnp.zeros((output_size,), jnp.float32),
    )


def tcn_model_forward(params, vid, trg, key, teacher_forcing_ratio=0.5):
    """vid: (B, S, input_size) f32, trg: (B, T) int32 token ids. Returns scalar mean CE loss."""
    B, S, Cin = vid.shape
    trg_t = trg.T                                                  # (T, B) == trg.transpose(1,0)
    T = trg_t.shape[0]
    K = params["tcn_w"].shape[2]
    pad = (K - 1) // 2

    # Only y[:, -1, :] (the last conv position) is consumed -> tail im2col window.
    # TODO(synk): a real injected TCN has a larger receptive field; only its tail
    #             window feeding the last position would need computing.
    x_pad = jnp.pad(vid, ((0, 0), (pad, pad), (0, 0)))             # (B, S+K-1, Cin)
    xtail = x_pad[:, S - 1:S - 1 + K, :].reshape(B, K * Cin)       # (B, K*Cin)

    # teacher-forcing decisions for t = 1..T-1, drawn up-front, scalar-prefetched
    tf_flags = (jax.random.uniform(key, (T - 1,)) < teacher_forcing_ratio).astype(jnp.int32)

    dp = prepare_params(params, VOCAB_PAD)                         # hoisted layout prep
    trg_onehot = jax.nn.one_hot(trg_t, VOCAB_PAD, dtype=jnp.float32)   # (T, B, Cp)

    return fused_forward_loss(dp, xtail, trg_onehot, tf_flags)     # CrossEntropyLoss (mean)


# ----------------------------------------------------------------------------
if __name__ == "__main__":
    key = jax.random.PRNGKey(0)
    kp, kv, kt, kr = jax.random.split(key, 4)

    B, S, INPUT_SIZE, OUTPUT_SIZE, TRG_LEN = 2, 16, 32, 30, 8   # view(-1, 30) => output_size=30

    params = init_params(kp, INPUT_SIZE, OUTPUT_SIZE)
    vid = jax.random.normal(kv, (B, S, INPUT_SIZE), jnp.float32)
    trg = jax.random.randint(kt, (B, TRG_LEN), 0, OUTPUT_SIZE, jnp.int32)

    fwd = jax.jit(tcn_model_forward)
    loss = fwd(params, vid, trg, kr)
    jax.block_until_ready(loss)
    print("KERNEL_OK")
</pallas_src>

<mosaic_0001>
module attributes {stable_mosaic.version = 11 : i64} {
  func.func @_fused_kernel(%arg0: i32, %arg1: memref<7xi32, #tpu.memory_space<smem>>, %arg2: memref<2x96xf32, #tpu.memory_space<vmem>>, %arg3: memref<96x32xbf16, #tpu.memory_space<vmem>>, %arg4: memref<1x32xf32, #tpu.memory_space<vmem>>, %arg5: memref<8x2x32xf32, #tpu.memory_space<vmem>>, %arg6: memref<32x32xbf16, #tpu.memory_space<vmem>>, %arg7: memref<32x128xbf16, #tpu.memory_space<vmem>>, %arg8: memref<32x96xbf16, #tpu.memory_space<vmem>>, %arg9: memref<32x128xbf16, #tpu.memory_space<vmem>>, %arg10: memref<32x32xbf16, #tpu.memory_space<vmem>>, %arg11: memref<1x96xf32, #tpu.memory_space<vmem>>, %arg12: memref<1x96xf32, #tpu.memory_space<vmem>>, %arg13: memref<1x32xf32, #tpu.memory_space<vmem>>, %arg14: memref<1x1xf32, #tpu.memory_space<vmem>>) attributes {dimension_semantics = [#tpu.dimension_semantics<arbitrary>], iteration_bounds = array<i64: 1>, scalar_prefetch = 1 : i64, scratch_operands = 0 : i64, tpu.core_type = #tpu.core_type<tc>, window_params = [{pipeline_mode = #tpu.pipeline_mode<synchronous>, transform_indices = @transform_0, window_bounds = array<i64: 2, 96>}, {pipeline_mode = #tpu.pipeline_mode<synchronous>, transform_indices = @transform_1, window_bounds = array<i64: 96, 32>}, {pipeline_mode = #tpu.pipeline_mode<synchronous>, transform_indices = @transform_2, window_bounds = array<i64: 1, 32>}, {pipeline_mode = #tpu.pipeline_mode<synchronous>, transform_indices = @transform_3, window_bounds = array<i64: 8, 2, 32>}, {pipeline_mode = #tpu.pipeline_mode<synchronous>, transform_indices = @transform_4, window_bounds = array<i64: 32, 32>}, {pipeline_mode = #tpu.pipeline_mode<synchronous>, transform_indices = @transform_5, window_bounds = array<i64: 32, 128>}, {pipeline_mode = #tpu.pipeline_mode<synchronous>, transform_indices = @transform_6, window_bounds = array<i64: 32, 96>}, {pipeline_mode = #tpu.pipeline_mode<synchronous>, transform_indices = @transform_7, window_bounds = array<i64: 32, 128>}, {pipeline_mode = #tpu.pipeline_mode<synchronous>, transform_indices = @transform_8, window_bounds = array<i64: 32, 32>}, {pipeline_mode = #tpu.pipeline_mode<synchronous>, transform_indices = @transform_9, window_bounds = array<i64: 1, 96>}, {pipeline_mode = #tpu.pipeline_mode<synchronous>, transform_indices = @transform_10, window_bounds = array<i64: 1, 96>}, {pipeline_mode = #tpu.pipeline_mode<synchronous>, transform_indices = @transform_11, window_bounds = array<i64: 1, 32>}, {pipeline_mode = #tpu.pipeline_mode<synchronous>, transform_indices = @transform_12, window_bounds = array<i64: 1, 1>}]} {
    %c0 = arith.constant 0 : index
    %c0_0 = arith.constant 0 : index
    %0 = vector.load %arg2[%c0, %c0_0] : memref<2x96xf32, #tpu.memory_space<vmem>>, vector<2x96xf32>
    %1 = arith.truncf %0 : vector<2x96xf32> to vector<2x96xbf16>
    %c0_1 = arith.constant 0 : index
    %c0_2 = arith.constant 0 : index
    %2 = vector.load %arg3[%c0_1, %c0_2] : memref<96x32xbf16, #tpu.memory_space<vmem>>, vector<96x32xbf16>
    %cst = arith.constant dense<0.000000e+00> : vector<2x32xf32>
    %3 = tpu.matmul %1, %2, %cst {dimension_numbers = #tpu.dot_dimension_numbers<[1], [0], [0], [1], [0, 0, 1, 1], [], []>} : vector<2x96xbf16>, vector<96x32xbf16>, vector<2x32xf32> -> vector<2x32xf32>
    %c0_3 = arith.constant 0 : index
    %c0_4 = arith.constant 0 : index
    %4 = vector.load %arg4[%c0_3, %c0_4] : memref<1x32xf32, #tpu.memory_space<vmem>>, vector<1x32xf32>
    %5 = vector.broadcast %4 : vector<1x32xf32> to vector<2x32xf32>
    %6 = arith.addf %3, %5 : vector<2x32xf32>
    %cst_5 = arith.constant 0.000000e+00 : f32
    %7 = vector.broadcast %cst_5 : f32 to vector<2x32xf32>
    %8 = arith.maximumf %6, %7 : vector<2x32xf32>
    %9 = arith.truncf %8 : vector<2x32xf32> to vector<2x32xbf16>
    %c0_6 = arith.constant 0 : index
    %c0_7 = arith.constant 0 : index
    %10 = vector.load %arg9[%c0_6, %c0_7] : memref<32x128xbf16, #tpu.memory_space<vmem>>, vector<32x128xbf16>
    %cst_8 = arith.constant dense<0.000000e+00> : vector<2x128xf32>
    %11 = tpu.matmul %9, %10, %cst_8 {dimension_numbers = #tpu.dot_dimension_numbers<[1], [0], [0], [1], [0, 0, 1, 1], [], []>} : vector<2x32xbf16>, vector<32x128xbf16>, vector<2x128xf32> -> vector<2x128xf32>
    %12 = vector.extract_strided_slice %11 {offsets = [0, 0], sizes = [2, 96], strides = [1, 1]} : vector<2x128xf32> to vector<2x96xf32>
    %c0_9 = arith.constant 0 : index
    %c0_10 = arith.constant 0 : index
    %13 = vector.load %arg11[%c0_9, %c0_10] : memref<1x96xf32, #tpu.memory_space<vmem>>, vector<1x96xf32>
    %14 = vector.broadcast %13 : vector<1x96xf32> to vector<2x96xf32>
    %15 = arith.addf %12, %14 : vector<2x96xf32>
    %16 = vector.extract_strided_slice %11 {offsets = [0, 96], sizes = [2, 32], strides = [1, 1]} : vector<2x128xf32> to vector<2x32xf32>
    %c0_11 = arith.constant 0 : index
    %c0_12 = arith.constant 0 : index
    %17 = vector.load %arg13[%c0_11, %c0_12] : memref<1x32xf32, #tpu.memory_space<vmem>>, vector<1x32xf32>
    %18 = vector.broadcast %17 : vector<1x32xf32> to vector<2x32xf32>
    %19 = arith.addf %16, %18 : vector<2x32xf32>
    %c0_13 = arith.constant 0 : index
    %c0_14 = arith.constant 0 : index
    %20 = vector.load %arg12[%c0_13, %c0_14] : memref<1x96xf32, #tpu.memory_space<vmem>>, vector<1x96xf32>
    %21 = tpu.iota {dimensions = array<i32: 1>} : vector<2x32xi32>
    %c0_15 = arith.constant 0 : index
    %c0_16 = arith.constant 0 : index
    %c0_17 = arith.constant 0 : index
    %22 = vector.load %arg5[%c0_15, %c0_16, %c0_17] : memref<8x2x32xf32, #tpu.memory_space<vmem>>, vector<1x2x32xf32>
    %23 = vector.shape_cast %22 : vector<1x2x32xf32> to vector<2x32xf32>
    %cst_18 = arith.constant 0.000000e+00 : f32
    %24 = vector.broadcast %cst_18 : f32 to vector<1x1xf32>
    %25 = arith.truncf %23 : vector<2x32xf32> to vector<2x32xbf16>
    %c0_19 = arith.constant 0 : index
    %c0_20 = arith.constant 0 : index
    %26 = vector.load %arg6[%c0_19, %c0_20] : memref<32x32xbf16, #tpu.memory_space<vmem>>, vector<32x32xbf16>
    %cst_21 = arith.constant dense<0.000000e+00> : vector<2x32xf32>
    %27 = tpu.matmul %25, %26, %cst_21 {dimension_numbers = #tpu.dot_dimension_numbers<[1], [0], [0], [1], [0, 0, 1, 1], [], []>} : vector<2x32xbf16>, vector<32x32xbf16>, vector<2x32xf32> -> vector<2x32xf32>
    %28 = arith.truncf %27 : vector<2x32xf32> to vector<2x32xbf16>
    %c0_22 = arith.constant 0 : index
    %c0_23 = arith.constant 0 : index
    %29 = vector.load %arg7[%c0_22, %c0_23] : memref<32x128xbf16, #tpu.memory_space<vmem>>, vector<32x128xbf16>
    %cst_24 = arith.constant dense<0.000000e+00> : vector<2x128xf32>
    %30 = tpu.matmul %28, %29, %cst_24 {dimension_numbers = #tpu.dot_dimension_numbers<[1], [0], [0], [1], [0, 0, 1, 1], [], []>} : vector<2x32xbf16>, vector<32x128xbf16>, vector<2x128xf32> -> vector<2x128xf32>
    %31 = vector.extract_strided_slice %30 {offsets = [0, 0], sizes = [2, 96], strides = [1, 1]} : vector<2x128xf32> to vector<2x96xf32>
    %32 = arith.addf %31, %15 : vector<2x96xf32>
    %33 = arith.truncf %8 : vector<2x32xf32> to vector<2x32xbf16>
    %c0_25 = arith.constant 0 : index
    %c0_26 = arith.constant 0 : index
    %34 = vector.load %arg8[%c0_25, %c0_26] : memref<32x96xbf16, #tpu.memory_space<vmem>>, vector<32x96xbf16>
    %cst_27 = arith.constant dense<0.000000e+00> : vector<2x96xf32>
    %35 = tpu.matmul %33, %34, %cst_27 {dimension_numbers = #tpu.dot_dimension_numbers<[1], [0], [0], [1], [0, 0, 1, 1], [], []>} : vector<2x32xbf16>, vector<32x96xbf16>, vector<2x96xf32> -> vector<2x96xf32>
    %36 = vector.broadcast %20 : vector<1x96xf32> to vector<2x96xf32>
    %37 = arith.addf %35, %36 : vector<2x96xf32>
    %38 = vector.extract_strided_slice %32 {offsets = [0, 0], sizes = [2, 32], strides = [1, 1]} : vector<2x96xf32> to vector<2x32xf32>
    %39 = vector.extract_strided_slice %37 {offsets = [0, 0], sizes = [2, 32], strides = [1, 1]} : vector<2x96xf32> to vector<2x32xf32>
    %40 = arith.addf %38, %39 : vector<2x32xf32>
    %41 = arith.negf %40 : vector<2x32xf32>
    %42 = math.exp %41 : vector<2x32xf32>
    %cst_28 = arith.constant 1.000000e+00 : f32
    %43 = vector.broadcast %cst_28 : f32 to vector<2x32xf32>
    %44 = arith.addf %43, %42 : vector<2x32xf32>
    %45 = arith.divf %43, %44 : vector<2x32xf32>
    %46 = vector.extract_strided_slice %32 {offsets = [0, 32], sizes = [2, 32], strides = [1, 1]} : vector<2x96xf32> to vector<2x32xf32>
    %47 = vector.extract_strided_slice %37 {offsets = [0, 32], sizes = [2, 32], strides = [1, 1]} : vector<2x96xf32> to vector<2x32xf32>
    %48 = arith.addf %46, %47 : vector<2x32xf32>
    %49 = arith.negf %48 : vector<2x32xf32>
    %50 = math.exp %49 : vector<2x32xf32>
    %cst_29 = arith.constant 1.000000e+00 : f32
    %51 = vector.broadcast %cst_29 : f32 to vector<2x32xf32>
    %52 = arith.addf %51, %50 : vector<2x32xf32>
    %53 = arith.divf %51, %52 : vector<2x32xf32>
    %54 = vector.extract_strided_slice %32 {offsets = [0, 64], sizes = [2, 32], strides = [1, 1]} : vector<2x96xf32> to vector<2x32xf32>
    %55 = vector.extract_strided_slice %37 {offsets = [0, 64], sizes = [2, 32], strides = [1, 1]} : vector<2x96xf32> to vector<2x32xf32>
    %56 = arith.mulf %45, %55 : vector<2x32xf32>
    %57 = arith.addf %54, %56 : vector<2x32xf32>
    %58 = math.tanh %57 : vector<2x32xf32>
    %cst_30 = arith.constant 1.000000e+00 : f32
    %59 = vector.broadcast %cst_30 : f32 to vector<2x32xf32>
    %60 = arith.subf %59, %53 : vector<2x32xf32>
    %61 = arith.mulf %60, %58 : vector<2x32xf32>
    %62 = arith.mulf %53, %8 : vector<2x32xf32>
    %63 = arith.addf %61, %62 : vector<2x32xf32>
    %64 = vector.extract_strided_slice %30 {offsets = [0, 96], sizes = [2, 32], strides = [1, 1]} : vector<2x128xf32> to vector<2x32xf32>
    %65 = arith.addf %64, %19 : vector<2x32xf32>
    %66 = arith.truncf %63 : vector<2x32xf32> to vector<2x32xbf16>
    %c0_31 = arith.constant 0 : index
    %c0_32 = arith.constant 0 : index
    %67 = vector.load %arg10[%c0_31, %c0_32] : memref<32x32xbf16, #tpu.memory_space<vmem>>, vector<32x32xbf16>
    %cst_33 = arith.constant dense<0.000000e+00> : vector<2x32xf32>
    %68 = tpu.matmul %66, %67, %cst_33 {dimension_numbers = #tpu.dot_dimension_numbers<[1], [0], [0], [1], [0, 0, 1, 1], [], []>} : vector<2x32xbf16>, vector<32x32xbf16>, vector<2x32xf32> -> vector<2x32xf32>
    %69 = arith.addf %65, %68 : vector<2x32xf32>
    %c1 = arith.constant 1 : index
    %c0_34 = arith.constant 0 : index
    %c0_35 = arith.constant 0 : index
    %70 = vector.load %arg5[%c1, %c0_34, %c0_35] : memref<8x2x32xf32, #tpu.memory_space<vmem>>, vector<1x2x32xf32>
    %71 = vector.shape_cast %70 : vector<1x2x32xf32> to vector<2x32xf32>
    %cst_36 = arith.constant dense<0xFF800000> : vector<2xf32>
    %72 = vector.multi_reduction <maximumf>, %69, %cst_36 [1] : vector<2x32xf32> to vector<2xf32>
    %73 = vector.shape_cast %72 : vector<2xf32> to vector<2x1xf32>
    %74 = vector.broadcast %73 : vector<2x1xf32> to vector<2x32xf32>
    %75 = arith.subf %69, %74 : vector<2x32xf32>
    %76 = math.exp %75 : vector<2x32xf32>
    %cst_37 = arith.constant dense<0.000000e+00> : vector<2xf32>
    %77 = vector.multi_reduction <add>, %76, %cst_37 [1] : vector<2x32xf32> to vector<2xf32>
    %78 = vector.shape_cast %77 : vector<2xf32> to vector<2x1xf32>
    %79 = math.log %78 : vector<2x1xf32>
    %80 = arith.addf %79, %73 : vector<2x1xf32>
    %81 = arith.mulf %69, %71 : vector<2x32xf32>
    %cst_38 = arith.constant dense<0.000000e+00> : vector<2xf32>
    %82 = vector.multi_reduction <add>, %81, %cst_38 [1] : vector<2x32xf32> to vector<2xf32>
    %83 = vector.shape_cast %82 : vector<2xf32> to vector<2x1xf32>
    %84 = arith.subf %80, %83 : vector<2x1xf32>
    %cst_39 = arith.constant dense<0.000000e+00> : vector<1xf32>
    %85 = vector.multi_reduction <add>, %84, %cst_39 [0] : vector<2x1xf32> to vector<1xf32>
    %86 = vector.shape_cast %85 : vector<1xf32> to vector<1x1xf32>
    %87 = arith.addf %24, %86 : vector<1x1xf32>
    %88 = vector.broadcast %73 : vector<2x1xf32> to vector<2x32xf32>
    %89 = arith.cmpf oeq, %69, %88 : vector<2x32xf32>
    %c32_i32 = arith.constant 32 : i32
    %90 = vector.broadcast %c32_i32 : i32 to vector<2x32xi32>
    %91 = arith.select %89, %21, %90 : vector<2x32xi1>, vector<2x32xi32>
    %cst_40 = arith.constant dense<2147483647> : vector<2xi32>
    %92 = vector.multi_reduction <minsi>, %91, %cst_40 [1] : vector<2x32xi32> to vector<2xi32>
    %93 = vector.shape_cast %92 : vector<2xi32> to vector<2x1xi32>
    %94 = vector.broadcast %93 : vector<2x1xi32> to vector<2x32xi32>
    %95 = arith.cmpi eq, %21, %94 : vector<2x32xi32>
    %96 = arith.extui %95 : vector<2x32xi1> to vector<2x32xi32>
    %97 = arith.sitofp %96 : vector<2x32xi32> to vector<2x32xf32>
    %c0_41 = arith.constant 0 : index
    %98 = memref.load %arg1[%c0_41] : memref<7xi32, #tpu.memory_space<smem>>
    %99 = arith.sitofp %98 : i32 to f32
    %100 = vector.broadcast %99 : f32 to vector<2x32xf32>
    %101 = arith.mulf %100, %71 : vector<2x32xf32>
    %cst_42 = arith.constant 1.000000e+00 : f32
    %102 = arith.subf %cst_42, %99 : f32
    %103 = vector.broadcast %102 : f32 to vector<2x32xf32>
    %104 = arith.mulf %103, %97 : vector<2x32xf32>
    %105 = arith.addf %101, %104 : vector<2x32xf32>
    %106 = arith.truncf %105 : vector<2x32xf32> to vector<2x32xbf16>
    %c0_43 = arith.constant 0 : index
    %c0_44 = arith.constant 0 : index
    %107 = vector.load %arg6[%c0_43, %c0_44] : memref<32x32xbf16, #tpu.memory_space<vmem>>, vector<32x32xbf16>
    %cst_45 = arith.constant dense<0.000000e+00> : vector<2x32xf32>
    %108 = tpu.matmul %106, %107, %cst_45 {dimension_numbers = #tpu.dot_dimension_numbers<[1], [0], [0], [1], [0, 0, 1, 1], [], []>} : vector<2x32xbf16>, vector<32x32xbf16>, vector<2x32xf32> -> vector<2x32xf32>
    %109 = arith.truncf %108 : vector<2x32xf32> to vector<2x32xbf16>
    %c0_46 = arith.constant 0 : index
    %c0_47 = arith.constant 0 : index
    %110 = vector.load %arg7[%c0_46, %c0_47] : memref<32x128xbf16, #tpu.memory_space<vmem>>, vector<32x128xbf16>
    %cst_48 = arith.constant dense<0.000000e+00> : vector<2x128xf32>
    %111 = tpu.matmul %109, %110, %cst_48 {dimension_numbers = #tpu.dot_dimension_numbers<[1], [0], [0], [1], [0, 0, 1, 1], [], []>} : vector<2x32xbf16>, vector<32x128xbf16>, vector<2x128xf32> -> vector<2x128xf32>
    %112 = vector.extract_strided_slice %111 {offsets = [0, 0], sizes = [2, 96], strides = [1, 1]} : vector<2x128xf32> to vector<2x96xf32>
    %113 = arith.addf %112, %15 : vector<2x96xf32>
    %114 = arith.truncf %63 : vector<2x32xf32> to vector<2x32xbf16>
    %c0_49 = arith.constant 0 : index
    %c0_50 = arith.constant 0 : index
    %115 = vector.load %arg8[%c0_49, %c0_50] : memref<32x96xbf16, #tpu.memory_space<vmem>>, vector<32x96xbf16>
    %cst_51 = arith.constant dense<0.000000e+00> : vector<2x96xf32>
    %116 = tpu.matmul %114, %115, %cst_51 {dimension_numbers = #tpu.dot_dimension_numbers<[1], [0], [0], [1], [0, 0, 1, 1], [], []>} : vector<2x32xbf16>, vector<32x96xbf16>, vector<2x96xf32> -> vector<2x96xf32>
    %117 = vector.broadcast %20 : vector<1x96xf32> to vector<2x96xf32>
    %118 = arith.addf %116, %117 : vector<2x96xf32>
    %119 = vector.extract_strided_slice %113 {offsets = [0, 0], sizes = [2, 32], strides = [1, 1]} : vector<2x96xf32> to vector<2x32xf32>
    %120 = vector.extract_strided_slice %118 {offsets = [0, 0], sizes = [2, 32], strides = [1, 1]} : vector<2x96xf32> to vector<2x32xf32>
    %121 = arith.addf %119, %120 : vector<2x32xf32>
    %122 = arith.negf %121 : vector<2x32xf32>
    %123 = math.exp %122 : vector<2x32xf32>
    %cst_52 = arith.constant 1.000000e+00 : f32
    %124 = vector.broadcast %cst_52 : f32 to vector<2x32xf32>
    %125 = arith.addf %124, %123 : vector<2x32xf32>
    %126 = arith.divf %124, %125 : vector<2x32xf32>
    %127 = vector.extract_strided_slice %113 {offsets = [0, 32], sizes = [2, 32], strides = [1, 1]} : vector<2x96xf32> to vector<2x32xf32>
    %128 = vector.extract_strided_slice %118 {offsets = [0, 32], sizes = [2, 32], strides = [1, 1]} : vector<2x96xf32> to vector<2x32xf32>
    %129 = arith.addf %127, %128 : vector<2x32xf32>
    %130 = arith.negf %129 : vector<2x32xf32>
    %131 = math.exp %130 : vector<2x32xf32>
    %cst_53 = arith.constant 1.000000e+00 : f32
    %132 = vector.broadcast %cst_53 : f32 to vector<2x32xf32>
    %133 = arith.addf %132, %131 : vector<2x32xf32>
    %134 = arith.divf %132, %133 : vector<2x32xf32>
    %135 = vector.extract_strided_slice %113 {offsets = [0, 64], sizes = [2, 32], strides = [1, 1]} : vector<2x96xf32> to vector<2x32xf32>
    %136 = vector.extract_strided_slice %118 {offsets = [0, 64], sizes = [2, 32], strides = [1, 1]} : vector<2x96xf32> to vector<2x32xf32>
    %137 = arith.mulf %126, %136 : vector<2x32xf32>
    %138 = arith.addf %135, %137 : vector<2x32xf32>
    %139 = math.tanh %138 : vector<2x32xf32>
    %cst_54 = arith.constant 1.000000e+00 : f32
    %140 = vector.broadcast %cst_54 : f32 to vector<2x32xf32>
    %141 = arith.subf %140, %134 : vector<2x32xf32>
    %142 = arith.mulf %141, %139 : vector<2x32xf32>
    %143 = arith.mulf %134, %63 : vector<2x32xf32>
    %144 = arith.addf %142, %143 : vector<2x32xf32>
    %145 = vector.extract_strided_slice %111 {offsets = [0, 96], sizes = [2, 32], strides = [1, 1]} : vector<2x128xf32> to vector<2x32xf32>
    %146 = arith.addf %145, %19 : vector<2x32xf32>
    %147 = arith.truncf %144 : vector<2x32xf32> to vector<2x32xbf16>
    %c0_55 = arith.constant 0 : index
    %c0_56 = arith.constant 0 : index
    %148 = vector.load %arg10[%c0_55, %c0_56] : memref<32x32xbf16, #tpu.memory_space<vmem>>, vector<32x32xbf16>
    %cst_57 = arith.constant dense<0.000000e+00> : vector<2x32xf32>
    %149 = tpu.matmul %147, %148, %cst_57 {dimension_numbers = #tpu.dot_dimension_numbers<[1], [0], [0], [1], [0, 0, 1, 1], [], []>} : vector<2x32xbf16>, vector<32x32xbf16>, vector<2x32xf32> -> vector<2x32xf32>
    %150 = arith.addf %146, %149 : vector<2x32xf32>
    %c2 = arith.constant 2 : index
    %c0_58 = arith.constant 0 : index
    %c0_59 = arith.constant 0 : index
    %151 = vector.load %arg5[%c2, %c0_58, %c0_59] : memref<8x2x32xf32, #tpu.memory_space<vmem>>, vector<1x2x32xf32>
    %152 = vector.shape_cast %151 : vector<1x2x32xf32> to vector<2x32xf32>
    %cst_60 = arith.constant dense<0xFF800000> : vector<2xf32>
    %153 = vector.multi_reduction <maximumf>, %150, %cst_60 [1] : vector<2x32xf32> to vector<2xf32>
    %154 = vector.shape_cast %153 : vector<2xf32> to vector<2x1xf32>
    %155 = vector.broadcast %154 : vector<2x1xf32> to vector<2x32xf32>
    %156 = arith.subf %150, %155 : vector<2x32xf32>
    %157 = math.exp %156 : vector<2x32xf32>
    %cst_61 = arith.constant dense<0.000000e+00> : vector<2xf32>
    %158 = vector.multi_reduction <add>, %157, %cst_61 [1] : vector<2x32xf32> to vector<2xf32>
    %159 = vector.shape_cast %158 : vector<2xf32> to vector<2x1xf32>
    %160 = math.log %159 : vector<2x1xf32>
    %161 = arith.addf %160, %154 : vector<2x1xf32>
    %162 = arith.mulf %150, %152 : vector<2x32xf32>
    %cst_62 = arith.constant dense<0.000000e+00> : vector<2xf32>
    %163 = vector.multi_reduction <add>, %162, %cst_62 [1] : vector<2x32xf32> to vector<2xf32>
    %164 = vector.shape_cast %163 : vector<2xf32> to vector<2x1xf32>
    %165 = arith.subf %161, %164 : vector<2x1xf32>
    %cst_63 = arith.constant dense<0.000000e+00> : vector<1xf32>
    %166 = vector.multi_reduction <add>, %165, %cst_63 [0] : vector<2x1xf32> to vector<1xf32>
    %167 = vector.shape_cast %166 : vector<1xf32> to vector<1x1xf32>
    %168 = arith.addf %87, %167 : vector<1x1xf32>
    %169 = vector.broadcast %154 : vector<2x1xf32> to vector<2x32xf32>
    %170 = arith.cmpf oeq, %150, %169 : vector<2x32xf32>
    %c32_i32_64 = arith.constant 32 : i32
    %171 = vector.broadcast %c32_i32_64 : i32 to vector<2x32xi32>
    %172 = arith.select %170, %21, %171 : vector<2x32xi1>, vector<2x32xi32>
    %cst_65 = arith.constant dense<2147483647> : vector<2xi32>
    %173 = vector.multi_reduction <minsi>, %172, %cst_65 [1] : vector<2x32xi32> to vector<2xi32>
    %174 = vector.shape_cast %173 : vector<2xi32> to vector<2x1xi32>
    %175 = vector.broadcast %174 : vector<2x1xi32> to vector<2x32xi32>
    %176 = arith.cmpi eq, %21, %175 : vector<2x32xi32>
    %177 = arith.extui %176 : vector<2x32xi1> to vector<2x32xi32>
    %178 = arith.sitofp %177 : vector<2x32xi32> to vector<2x32xf32>
    %c1_66 = arith.constant 1 : index
    %179 = memref.load %arg1[%c1_66] : memref<7xi32, #tpu.memory_space<smem>>
    %180 = arith.sitofp %179 : i32 to f32
    %181 = vector.broadcast %180 : f32 to vector<2x32xf32>
    %182 = arith.mulf %181, %152 : vector<2x32xf32>
    %cst_67 = arith.constant 1.000000e+00 : f32
    %183 = arith.subf %cst_67, %180 : f32
    %184 = vector.broadcast %183 : f32 to vector<2x32xf32>
    %185 = arith.mulf %184, %178 : vector<2x32xf32>
    %186 = arith.addf %182, %185 : vector<2x32xf32>
    %187 = arith.truncf %186 : vector<2x32xf32> to vector<2x32xbf16>
    %c0_68 = arith.constant 0 : index
    %c0_69 = arith.constant 0 : index
    %188 = vector.load %arg6[%c0_68, %c0_69] : memref<32x32xbf16, #tpu.memory_space<vmem>>, vector<32x32xbf16>
    %cst_70 = arith.constant dense<0.000000e+00> : vector<2x32xf32>
    %189 = tpu.matmul %187, %188, %cst_70 {dimension_numbers = #tpu.dot_dimension_numbers<[1], [0], [0], [1], [0, 0, 1, 1], [], []>} : vector<2x32xbf16>, vector<32x32xbf16>, vector<2x32xf32> -> vector<2x32xf32>
    %190 = arith.truncf %189 : vector<2x32xf32> to vector<2x32xbf16>
    %c0_71 = arith.constant 0 : index
    %c0_72 = arith.constant 0 : index
    %191 = vector.load %arg7[%c0_71, %c0_72] : memref<32x128xbf16, #tpu.memory_space<vmem>>, vector<32x128xbf16>
    %cst_73 = arith.constant dense<0.000000e+00> : vector<2x128xf32>
    %192 = tpu.matmul %190, %191, %cst_73 {dimension_numbers = #tpu.dot_dimension_numbers<[1], [0], [0], [1], [0, 0, 1, 1], [], []>} : vector<2x32xbf16>, vector<32x128xbf16>, vector<2x128xf32> -> vector<2x128xf32>
    %193 = vector.extract_strided_slice %192 {offsets = [0, 0], sizes = [2, 96], strides = [1, 1]} : vector<2x128xf32> to vector<2x96xf32>
    %194 = arith.addf %193, %15 : vector<2x96xf32>
    %195 = arith.truncf %144 : vector<2x32xf32> to vector<2x32xbf16>
    %c0_74 = arith.constant 0 : index
    %c0_75 = arith.constant 0 : index
    %196 = vector.load %arg8[%c0_74, %c0_75] : memref<32x96xbf16, #tpu.memory_space<vmem>>, vector<32x96xbf16>
    %cst_76 = arith.constant dense<0.000000e+00> : vector<2x96xf32>
    %197 = tpu.matmul %195, %196, %cst_76 {dimension_numbers = #tpu.dot_dimension_numbers<[1], [0], [0], [1], [0, 0, 1, 1], [], []>} : vector<2x32xbf16>, vector<32x96xbf16>, vector<2x96xf32> -> vector<2x96xf32>
    %198 = vector.broadcast %20 : vector<1x96xf32> to vector<2x96xf32>
    %199 = arith.addf %197, %198 : vector<2x96xf32>
    %200 = vector.extract_strided_slice %194 {offsets = [0, 0], sizes = [2, 32], strides = [1, 1]} : vector<2x96xf32> to vector<2x32xf32>
    %201 = vector.extract_strided_slice %199 {offsets = [0, 0], sizes = [2, 32], strides = [1, 1]} : vector<2x96xf32> to vector<2x32xf32>
    %202 = arith.addf %200, %201 : vector<2x32xf32>
    %203 = arith.negf %202 : vector<2x32xf32>
    %204 = math.exp %203 : vector<2x32xf32>
    %cst_77 = arith.constant 1.000000e+00 : f32
    %205 = vector.broadcast %cst_77 : f32 to vector<2x32xf32>
    %206 = arith.addf %205, %204 : vector<2x32xf32>
    %207 = arith.divf %205, %206 : vector<2x32xf32>
    %208 = vector.extract_strided_slice %194 {offsets = [0, 32], sizes = [2, 32], strides = [1, 1]} : vector<2x96xf32> to vector<2x32xf32>
    %209 = vector.extract_strided_slice %199 {offsets = [0, 32], sizes = [2, 32], strides = [1, 1]} : vector<2x96xf32> to vector<2x32xf32>
    %210 = arith.addf %208, %209 : vector<2x32xf32>
    %211 = arith.negf %210 : vector<2x32xf32>
    %212 = math.exp %211 : vector<2x32xf32>
    %cst_78 = arith.constant 1.000000e+00 : f32
    %213 = vector.broadcast %cst_78 : f32 to vector<2x32xf32>
    %214 = arith.addf %213, %212 : vector<2x32xf32>
    %215 = arith.divf %213, %214 : vector<2x32xf32>
    %216 = vector.extract_strided_slice %194 {offsets = [0, 64], sizes = [2, 32], strides = [1, 1]} : vector<2x96xf32> to vector<2x32xf32>
    %217 = vector.extract_strided_slice %199 {offsets = [0, 64], sizes = [2, 32], strides = [1, 1]} : vector<2x96xf32> to vector<2x32xf32>
    %218 = arith.mulf %207, %217 : vector<2x32xf32>
    %219 = arith.addf %216, %218 : vector<2x32xf32>
    %220 = math.tanh %219 : vector<2x32xf32>
    %cst_79 = arith.constant 1.000000e+00 : f32
    %221 = vector.broadcast %cst_79 : f32 to vector<2x32xf32>
    %222 = arith.subf %221, %215 : vector<2x32xf32>
    %223 = arith.mulf %222, %220 : vector<2x32xf32>
    %224 = arith.mulf %215, %144 : vector<2x32xf32>
    %225 = arith.addf %223, %224 : vector<2x32xf32>
    %226 = vector.extract_strided_slice %192 {offsets = [0, 96], sizes = [2, 32], strides = [1, 1]} : vector<2x128xf32> to vector<2x32xf32>
    %227 = arith.addf %226, %19 : vector<2x32xf32>
    %228 = arith.truncf %225 : vector<2x32xf32> to vector<2x32xbf16>
    %c0_80 = arith.constant 0 : index
    %c0_81 = arith.constant 0 : index
    %229 = vector.load %arg10[%c0_80, %c0_81] : memref<32x32xbf16, #tpu.memory_space<vmem>>, vector<32x32xbf16>
    %cst_82 = arith.constant dense<0.000000e+00> : vector<2x32xf32>
    %230 = tpu.matmul %228, %229, %cst_82 {dimension_numbers = #tpu.dot_dimension_numbers<[1], [0], [0], [1], [0, 0, 1, 1], [], []>} : vector<2x32xbf16>, vector<32x32xbf16>, vector<2x32xf32> -> vector<2x32xf32>
    %231 = arith.addf %227, %230 : vector<2x32xf32>
    %c3 = arith.constant 3 : index
    %c0_83 = arith.constant 0 : index
    %c0_84 = arith.constant 0 : index
    %232 = vector.load %arg5[%c3, %c0_83, %c0_84] : memref<8x2x32xf32, #tpu.memory_space<vmem>>, vector<1x2x32xf32>
    %233 = vector.shape_cast %232 : vector<1x2x32xf32> to vector<2x32xf32>
    %cst_85 = arith.constant dense<0xFF800000> : vector<2xf32>
    %234 = vector.multi_reduction <maximumf>, %231, %cst_85 [1] : vector<2x32xf32> to vector<2xf32>
    %235 = vector.shape_cast %234 : vector<2xf32> to vector<2x1xf32>
    %236 = vector.broadcast %235 : vector<2x1xf32> to vector<2x32xf32>
    %237 = arith.subf %231, %236 : vector<2x32xf32>
    %238 = math.exp %237 : vector<2x32xf32>
    %cst_86 = arith.constant dense<0.000000e+00> : vector<2xf32>
    %239 = vector.multi_reduction <add>, %238, %cst_86 [1] : vector<2x32xf32> to vector<2xf32>
    %240 = vector.shape_cast %239 : vector<2xf32> to vector<2x1xf32>
    %241 = math.log %240 : vector<2x1xf32>
    %242 = arith.addf %241, %235 : vector<2x1xf32>
    %243 = arith.mulf %231, %233 : vector<2x32xf32>
    %cst_87 = arith.constant dense<0.000000e+00> : vector<2xf32>
    %244 = vector.multi_reduction <add>, %243, %cst_87 [1] : vector<2x32xf32> to vector<2xf32>
    %245 = vector.shape_cast %244 : vector<2xf32> to vector<2x1xf32>
    %246 = arith.subf %242, %245 : vector<2x1xf32>
    %cst_88 = arith.constant dense<0.000000e+00> : vector<1xf32>
    %247 = vector.multi_reduction <add>, %246, %cst_88 [0] : vector<2x1xf32> to vector<1xf32>
    %248 = vector.shape_cast %247 : vector<1xf32> to vector<1x1xf32>
    %249 = arith.addf %168, %248 : vector<1x1xf32>
    %250 = vector.broadcast %235 : vector<2x1xf32> to vector<2x32xf32>
    %251 = arith.cmpf oeq, %231, %250 : vector<2x32xf32>
    %c32_i32_89 = arith.constant 32 : i32
    %252 = vector.broadcast %c32_i32_89 : i32 to vector<2x32xi32>
    %253 = arith.select %251, %21, %252 : vector<2x32xi1>, vector<2x32xi32>
    %cst_90 = arith.constant dense<2147483647> : vector<2xi32>
    %254 = vector.multi_reduction <minsi>, %253, %cst_90 [1] : vector<2x32xi32> to vector<2xi32>
    %255 = vector.shape_cast %254 : vector<2xi32> to vector<2x1xi32>
    %256 = vector.broadcast %255 : vector<2x1xi32> to vector<2x32xi32>
    %257 = arith.cmpi eq, %21, %256 : vector<2x32xi32>
    %258 = arith.extui %257 : vector<2x32xi1> to vector<2x32xi32>
    %259 = arith.sitofp %258 : vector<2x32xi32> to vector<2x32xf32>
    %c2_91 = arith.constant 2 : index
    %260 = memref.load %arg1[%c2_91] : memref<7xi32, #tpu.memory_space<smem>>
    %261 = arith.sitofp %260 : i32 to f32
    %262 = vector.broadcast %261 : f32 to vector<2x32xf32>
    %263 = arith.mulf %262, %233 : vector<2x32xf32>
    %cst_92 = arith.constant 1.000000e+00 : f32
    %264 = arith.subf %cst_92, %261 : f32
    %265 = vector.broadcast %264 : f32 to vector<2x32xf32>
    %266 = arith.mulf %265, %259 : vector<2x32xf32>
    %267 = arith.addf %263, %266 : vector<2x32xf32>
    %268 = arith.truncf %267 : vector<2x32xf32> to vector<2x32xbf16>
    %c0_93 = arith.constant 0 : index
    %c0_94 = arith.constant 0 : index
    %269 = vector.load %arg6[%c0_93, %c0_94] : memref<32x32xbf16, #tpu.memory_space<vmem>>, vector<32x32xbf16>
    %cst_95 = arith.constant dense<0.000000e+00> : vector<2x32xf32>
    %270 = tpu.matmul %268, %269, %cst_95 {dimension_numbers = #tpu.dot_dimension_numbers<[1], [0], [0], [1], [0, 0, 1, 1], [], []>} : vector<2x32xbf16>, vector<32x32xbf16>, vector<2x32xf32> -> vector<2x32xf32>
    %271 = arith.truncf %270 : vector<2x32xf32> to vector<2x32xbf16>
    %c0_96 = arith.constant 0 : index
    %c0_97 = arith.constant 0 : index
    %272 = vector.load %arg7[%c0_96, %c0_97] : memref<32x128xbf16, #tpu.memory_space<vmem>>, vector<32x128xbf16>
    %cst_98 = arith.constant dense<0.000000e+00> : vector<2x128xf32>
    %273 = tpu.matmul %271, %272, %cst_98 {dimension_numbers = #tpu.dot_dimension_numbers<[1], [0], [0], [1], [0, 0, 1, 1], [], []>} : vector<2x32xbf16>, vector<32x128xbf16>, vector<2x128xf32> -> vector<2x128xf32>
    %274 = vector.extract_strided_slice %273 {offsets = [0, 0], sizes = [2, 96], strides = [1, 1]} : vector<2x128xf32> to vector<2x96xf32>
    %275 = arith.addf %274, %15 : vector<2x96xf32>
    %276 = arith.truncf %225 : vector<2x32xf32> to vector<2x32xbf16>
    %c0_99 = arith.constant 0 : index
    %c0_100 = arith.constant 0 : index
    %277 = vector.load %arg8[%c0_99, %c0_100] : memref<32x96xbf16, #tpu.memory_space<vmem>>, vector<32x96xbf16>
    %cst_101 = arith.constant dense<0.000000e+00> : vector<2x96xf32>
    %278 = tpu.matmul %276, %277, %cst_101 {dimension_numbers = #tpu.dot_dimension_numbers<[1], [0], [0], [1], [0, 0, 1, 1], [], []>} : vector<2x32xbf16>, vector<32x96xbf16>, vector<2x96xf32> -> vector<2x96xf32>
    %279 = vector.broadcast %20 : vector<1x96xf32> to vector<2x96xf32>
    %280 = arith.addf %278, %279 : vector<2x96xf32>
    %281 = vector.extract_strided_slice %275 {offsets = [0, 0], sizes = [2, 32], strides = [1, 1]} : vector<2x96xf32> to vector<2x32xf32>
    %282 = vector.extract_strided_slice %280 {offsets = [0, 0], sizes = [2, 32], strides = [1, 1]} : vector<2x96xf32> to vector<2x32xf32>
    %283 = arith.addf %281, %282 : vector<2x32xf32>
    %284 = arith.negf %283 : vector<2x32xf32>
    %285 = math.exp %284 : vector<2x32xf32>
    %cst_102 = arith.constant 1.000000e+00 : f32
    %286 = vector.broadcast %cst_102 : f32 to vector<2x32xf32>
    %287 = arith.addf %286, %285 : vector<2x32xf32>
    %288 = arith.divf %286, %287 : vector<2x32xf32>
    %289 = vector.extract_strided_slice %275 {offsets = [0, 32], sizes = [2, 32], strides = [1, 1]} : vector<2x96xf32> to vector<2x32xf32>
    %290 = vector.extract_strided_slice %280 {offsets = [0, 32], sizes = [2, 32], strides = [1, 1]} : vector<2x96xf32> to vector<2x32xf32>
    %291 = arith.addf %289, %290 : vector<2x32xf32>
    %292 = arith.negf %291 : vector<2x32xf32>
    %293 = math.exp %292 : vector<2x32xf32>
    %cst_103 = arith.constant 1.000000e+00 : f32
    %294 = vector.broadcast %cst_103 : f32 to vector<2x32xf32>
    %295 = arith.addf %294, %293 : vector<2x32xf32>
    %296 = arith.divf %294, %295 : vector<2x32xf32>
    %297 = vector.extract_strided_slice %275 {offsets = [0, 64], sizes = [2, 32], strides = [1, 1]} : vector<2x96xf32> to vector<2x32xf32>
    %298 = vector.extract_strided_slice %280 {offsets = [0, 64], sizes = [2, 32], strides = [1, 1]} : vector<2x96xf32> to vector<2x32xf32>
    %299 = arith.mulf %288, %298 : vector<2x32xf32>
    %300 = arith.addf %297, %299 : vector<2x32xf32>
    %301 = math.tanh %300 : vector<2x32xf32>
    %cst_104 = arith.constant 1.000000e+00 : f32
    %302 = vector.broadcast %cst_104 : f32 to vector<2x32xf32>
    %303 = arith.subf %302, %296 : vector<2x32xf32>
    %304 = arith.mulf %303, %301 : vector<2x32xf32>
    %305 = arith.mulf %296, %225 : vector<2x32xf32>
    %306 = arith.addf %304, %305 : vector<2x32xf32>
    %307 = vector.extract_strided_slice %273 {offsets = [0, 96], sizes = [2, 32], strides = [1, 1]} : vector<2x128xf32> to vector<2x32xf32>
    %308 = arith.addf %307, %19 : vector<2x32xf32>
    %309 = arith.truncf %306 : vector<2x32xf32> to vector<2x32xbf16>
    %c0_105 = arith.constant 0 : index
    %c0_106 = arith.constant 0 : index
    %310 = vector.load %arg10[%c0_105, %c0_106] : memref<32x32xbf16, #tpu.memory_space<vmem>>, vector<32x32xbf16>
    %cst_107 = arith.constant dense<0.000000e+00> : vector<2x32xf32>
    %311 = tpu.matmul %309, %310, %cst_107 {dimension_numbers = #tpu.dot_dimension_numbers<[1], [0], [0], [1], [0, 0, 1, 1], [], []>} : vector<2x32xbf16>, vector<32x32xbf16>, vector<2x32xf32> -> vector<2x32xf32>
    %312 = arith.addf %308, %311 : vector<2x32xf32>
    %c4 = arith.constant 4 : index
    %c0_108 = arith.constant 0 : index
    %c0_109 = arith.constant 0 : index
    %313 = vector.load %arg5[%c4, %c0_108, %c0_109] : memref<8x2x32xf32, #tpu.memory_space<vmem>>, vector<1x2x32xf32>
    %314 = vector.shape_cast %313 : vector<1x2x32xf32> to vector<2x32xf32>
    %cst_110 = arith.constant dense<0xFF800000> : vector<2xf32>
    %315 = vector.multi_reduction <maximumf>, %312, %cst_110 [1] : vector<2x32xf32> to vector<2xf32>
    %316 = vector.shape_cast %315 : vector<2xf32> to vector<2x1xf32>
    %317 = vector.broadcast %316 : vector<2x1xf32> to vector<2x32xf32>
    %318 = arith.subf %312, %317 : vector<2x32xf32>
    %319 = math.exp %318 : vector<2x32xf32>
    %cst_111 = arith.constant dense<0.000000e+00> : vector<2xf32>
    %320 = vector.multi_reduction <add>, %319, %cst_111 [1] : vector<2x32xf32> to vector<2xf32>
    %321 = vector.shape_cast %320 : vector<2xf32> to vector<2x1xf32>
    %322 = math.log %321 : vector<2x1xf32>
    %323 = arith.addf %322, %316 : vector<2x1xf32>
    %324 = arith.mulf %312, %314 : vector<2x32xf32>
    %cst_112 = arith.constant dense<0.000000e+00> : vector<2xf32>
    %325 = vector.multi_reduction <add>, %324, %cst_112 [1] : vector<2x32xf32> to vector<2xf32>
    %326 = vector.shape_cast %325 : vector<2xf32> to vector<2x1xf32>
    %327 = arith.subf %323, %326 : vector<2x1xf32>
    %cst_113 = arith.constant dense<0.000000e+00> : vector<1xf32>
    %328 = vector.multi_reduction <add>, %327, %cst_113 [0] : vector<2x1xf32> to vector<1xf32>
    %329 = vector.shape_cast %328 : vector<1xf32> to vector<1x1xf32>
    %330 = arith.addf %249, %329 : vector<1x1xf32>
    %331 = vector.broadcast %316 : vector<2x1xf32> to vector<2x32xf32>
    %332 = arith.cmpf oeq, %312, %331 : vector<2x32xf32>
    %c32_i32_114 = arith.constant 32 : i32
    %333 = vector.broadcast %c32_i32_114 : i32 to vector<2x32xi32>
    %334 = arith.select %332, %21, %333 : vector<2x32xi1>, vector<2x32xi32>
    %cst_115 = arith.constant dense<2147483647> : vector<2xi32>
    %335 = vector.multi_reduction <minsi>, %334, %cst_115 [1] : vector<2x32xi32> to vector<2xi32>
    %336 = vector.shape_cast %335 : vector<2xi32> to vector<2x1xi32>
    %337 = vector.broadcast %336 : vector<2x1xi32> to vector<2x32xi32>
    %338 = arith.cmpi eq, %21, %337 : vector<2x32xi32>
    %339 = arith.extui %338 : vector<2x32xi1> to vector<2x32xi32>
    %340 = arith.sitofp %339 : vector<2x32xi32> to vector<2x32xf32>
    %c3_116 = arith.constant 3 : index
    %341 = memref.load %arg1[%c3_116] : memref<7xi32, #tpu.memory_space<smem>>
    %342 = arith.sitofp %341 : i32 to f32
    %343 = vector.broadcast %342 : f32 to vector<2x32xf32>
    %344 = arith.mulf %343, %314 : vector<2x32xf32>
    %cst_117 = arith.constant 1.000000e+00 : f32
    %345 = arith.subf %cst_117, %342 : f32
    %346 = vector.broadcast %345 : f32 to vector<2x32xf32>
    %347 = arith.mulf %346, %340 : vector<2x32xf32>
    %348 = arith.addf %344, %347 : vector<2x32xf32>
    %349 = arith.truncf %348 : vector<2x32xf32> to vector<2x32xbf16>
    %c0_118 = arith.constant 0 : index
    %c0_119 = arith.constant 0 : index
    %350 = vector.load %arg6[%c0_118, %c0_119] : memref<32x32xbf16, #tpu.memory_space<vmem>>, vector<32x32xbf16>
    %cst_120 = arith.constant dense<0.000000e+00> : vector<2x32xf32>
    %351 = tpu.matmul %349, %350, %cst_120 {dimension_numbers = #tpu.dot_dimension_numbers<[1], [0], [0], [1], [0, 0, 1, 1], [], []>} : vector<2x32xbf16>, vector<32x32xbf16>, vector<2x32xf32> -> vector<2x32xf32>
    %352 = arith.truncf %351 : vector<2x32xf32> to vector<2x32xbf16>
    %c0_121 = arith.constant 0 : index
    %c0_122 = arith.constant 0 : index
    %353 = vector.load %arg7[%c0_121, %c0_122] : memref<32x128xbf16, #tpu.memory_space<vmem>>, vector<32x128xbf16>
    %cst_123 = arith.constant dense<0.000000e+00> : vector<2x128xf32>
    %354 = tpu.matmul %352, %353, %cst_123 {dimension_numbers = #tpu.dot_dimension_numbers<[1], [0], [0], [1], [0, 0, 1, 1], [], []>} : vector<2x32xbf16>, vector<32x128xbf16>, vector<2x128xf32> -> vector<2x128xf32>
    %355 = vector.extract_strided_slice %354 {offsets = [0, 0], sizes = [2, 96], strides = [1, 1]} : vector<2x128xf32> to vector<2x96xf32>
    %356 = arith.addf %355, %15 : vector<2x96xf32>
    %357 = arith.truncf %306 : vector<2x32xf32> to vector<2x32xbf16>
    %c0_124 = arith.constant 0 : index
    %c0_125 = arith.constant 0 : index
    %358 = vector.load %arg8[%c0_124, %c0_125] : memref<32x96xbf16, #tpu.memory_space<vmem>>, vector<32x96xbf16>
    %cst_126 = arith.constant dense<0.000000e+00> : vector<2x96xf32>
    %359 = tpu.matmul %357, %358, %cst_126 {dimension_numbers = #tpu.dot_dimension_numbers<[1], [0], [0], [1], [0, 0, 1, 1], [], []>} : vector<2x32xbf16>, vector<32x96xbf16>, vector<2x96xf32> -> vector<2x96xf32>
    %360 = vector.broadcast %20 : vector<1x96xf32> to vector<2x96xf32>
    %361 = arith.addf %359, %360 : vector<2x96xf32>
    %362 = vector.extract_strided_slice %356 {offsets = [0, 0], sizes = [2, 32], strides = [1, 1]} : vector<2x96xf32> to vector<2x32xf32>
    %363 = vector.extract_strided_slice %361 {offsets = [0, 0], sizes = [2, 32], strides = [1, 1]} : vector<2x96xf32> to vector<2x32xf32>
    %364 = arith.addf %362, %363 : vector<2x32xf32>
    %365 = arith.negf %364 : vector<2x32xf32>
    %366 = math.exp %365 : vector<2x32xf32>
    %cst_127 = arith.constant 1.000000e+00 : f32
    %367 = vector.broadcast %cst_127 : f32 to vector<2x32xf32>
    %368 = arith.addf %367, %366 : vector<2x32xf32>
    %369 = arith.divf %367, %368 : vector<2x32xf32>
    %370 = vector.extract_strided_slice %356 {offsets = [0, 32], sizes = [2, 32], strides = [1, 1]} : vector<2x96xf32> to vector<2x32xf32>
    %371 = vector.extract_strided_slice %361 {offsets = [0, 32], sizes = [2, 32], strides = [1, 1]} : vector<2x96xf32> to vector<2x32xf32>
    %372 = arith.addf %370, %371 : vector<2x32xf32>
    %373 = arith.negf %372 : vector<2x32xf32>
    %374 = math.exp %373 : vector<2x32xf32>
    %cst_128 = arith.constant 1.000000e+00 : f32
    %375 = vector.broadcast %cst_128 : f32 to vector<2x32xf32>
    %376 = arith.addf %375, %374 : vector<2x32xf32>
    %377 = arith.divf %375, %376 : vector<2x32xf32>
    %378 = vector.extract_strided_slice %356 {offsets = [0, 64], sizes = [2, 32], strides = [1, 1]} : vector<2x96xf32> to vector<2x32xf32>
    %379 = vector.extract_strided_slice %361 {offsets = [0, 64], sizes = [2, 32], strides = [1, 1]} : vector<2x96xf32> to vector<2x32xf32>
    %380 = arith.mulf %369, %379 : vector<2x32xf32>
    %381 = arith.addf %378, %380 : vector<2x32xf32>
    %382 = math.tanh %381 : vector<2x32xf32>
    %cst_129 = arith.constant 1.000000e+00 : f32
    %383 = vector.broadcast %cst_129 : f32 to vector<2x32xf32>
    %384 = arith.subf %383, %377 : vector<2x32xf32>
    %385 = arith.mulf %384, %382 : vector<2x32xf32>
    %386 = arith.mulf %377, %306 : vector<2x32xf32>
    %387 = arith.addf %385, %386 : vector<2x32xf32>
    %388 = vector.extract_strided_slice %354 {offsets = [0, 96], sizes = [2, 32], strides = [1, 1]} : vector<2x128xf32> to vector<2x32xf32>
    %389 = arith.addf %388, %19 : vector<2x32xf32>
    %390 = arith.truncf %387 : vector<2x32xf32> to vector<2x32xbf16>
    %c0_130 = arith.constant 0 : index
    %c0_131 = arith.constant 0 : index
    %391 = vector.load %arg10[%c0_130, %c0_131] : memref<32x32xbf16, #tpu.memory_space<vmem>>, vector<32x32xbf16>
    %cst_132 = arith.constant dense<0.000000e+00> : vector<2x32xf32>
    %392 = tpu.matmul %390, %391, %cst_132 {dimension_numbers = #tpu.dot_dimension_numbers<[1], [0], [0], [1], [0, 0, 1, 1], [], []>} : vector<2x32xbf16>, vector<32x32xbf16>, vector<2x32xf32> -> vector<2x32xf32>
    %393 = arith.addf %389, %392 : vector<2x32xf32>
    %c5 = arith.constant 5 : index
    %c0_133 = arith.constant 0 : index
    %c0_134 = arith.constant 0 : index
    %394 = vector.load %arg5[%c5, %c0_133, %c0_134] : memref<8x2x32xf32, #tpu.memory_space<vmem>>, vector<1x2x32xf32>
    %395 = vector.shape_cast %394 : vector<1x2x32xf32> to vector<2x32xf32>
    %cst_135 = arith.constant dense<0xFF800000> : vector<2xf32>
    %396 = vector.multi_reduction <maximumf>, %393, %cst_135 [1] : vector<2x32xf32> to vector<2xf32>
    %397 = vector.shape_cast %396 : vector<2xf32> to vector<2x1xf32>
    %398 = vector.broadcast %397 : vector<2x1xf32> to vector<2x32xf32>
    %399 = arith.subf %393, %398 : vector<2x32xf32>
    %400 = math.exp %399 : vector<2x32xf32>
    %cst_136 = arith.constant dense<0.000000e+00> : vector<2xf32>
    %401 = vector.multi_reduction <add>, %400, %cst_136 [1] : vector<2x32xf32> to vector<2xf32>
    %402 = vector.shape_cast %401 : vector<2xf32> to vector<2x1xf32>
    %403 = math.log %402 : vector<2x1xf32>
    %404 = arith.addf %403, %397 : vector<2x1xf32>
    %405 = arith.mulf %393, %395 : vector<2x32xf32>
    %cst_137 = arith.constant dense<0.000000e+00> : vector<2xf32>
    %406 = vector.multi_reduction <add>, %405, %cst_137 [1] : vector<2x32xf32> to vector<2xf32>
    %407 = vector.shape_cast %406 : vector<2xf32> to vector<2x1xf32>
    %408 = arith.subf %404, %407 : vector<2x1xf32>
    %cst_138 = arith.constant dense<0.000000e+00> : vector<1xf32>
    %409 = vector.multi_reduction <add>, %408, %cst_138 [0] : vector<2x1xf32> to vector<1xf32>
    %410 = vector.shape_cast %409 : vector<1xf32> to vector<1x1xf32>
    %411 = arith.addf %330, %410 : vector<1x1xf32>
    %412 = vector.broadcast %397 : vector<2x1xf32> to vector<2x32xf32>
    %413 = arith.cmpf oeq, %393, %412 : vector<2x32xf32>
    %c32_i32_139 = arith.constant 32 : i32
    %414 = vector.broadcast %c32_i32_139 : i32 to vector<2x32xi32>
    %415 = arith.select %413, %21, %414 : vector<2x32xi1>, vector<2x32xi32>
    %cst_140 = arith.constant dense<2147483647> : vector<2xi32>
    %416 = vector.multi_reduction <minsi>, %415, %cst_140 [1] : vector<2x32xi32> to vector<2xi32>
    %417 = vector.shape_cast %416 : vector<2xi32> to vector<2x1xi32>
    %418 = vector.broadcast %417 : vector<2x1xi32> to vector<2x32xi32>
    %419 = arith.cmpi eq, %21, %418 : vector<2x32xi32>
    %420 = arith.extui %419 : vector<2x32xi1> to vector<2x32xi32>
    %421 = arith.sitofp %420 : vector<2x32xi32> to vector<2x32xf32>
    %c4_141 = arith.constant 4 : index
    %422 = memref.load %arg1[%c4_141] : memref<7xi32, #tpu.memory_space<smem>>
    %423 = arith.sitofp %422 : i32 to f32
    %424 = vector.broadcast %423 : f32 to vector<2x32xf32>
    %425 = arith.mulf %424, %395 : vector<2x32xf32>
    %cst_142 = arith.constant 1.000000e+00 : f32
    %426 = arith.subf %cst_142, %423 : f32
    %427 = vector.broadcast %426 : f32 to vector<2x32xf32>
    %428 = arith.mulf %427, %421 : vector<2x32xf32>
    %429 = arith.addf %425, %428 : vector<2x32xf32>
    %430 = arith.truncf %429 : vector<2x32xf32> to vector<2x32xbf16>
    %c0_143 = arith.constant 0 : index
    %c0_144 = arith.constant 0 : index
    %431 = vector.load %arg6[%c0_143, %c0_144] : memref<32x32xbf16, #tpu.memory_space<vmem>>, vector<32x32xbf16>
    %cst_145 = arith.constant dense<0.000000e+00> : vector<2x32xf32>
    %432 = tpu.matmul %430, %431, %cst_145 {dimension_numbers = #tpu.dot_dimension_numbers<[1], [0], [0], [1], [0, 0, 1, 1], [], []>} : vector<2x32xbf16>, vector<32x32xbf16>, vector<2x32xf32> -> vector<2x32xf32>
    %433 = arith.truncf %432 : vector<2x32xf32> to vector<2x32xbf16>
    %c0_146 = arith.constant 0 : index
    %c0_147 = arith.constant 0 : index
    %434 = vector.load %arg7[%c0_146, %c0_147] : memref<32x128xbf16, #tpu.memory_space<vmem>>, vector<32x128xbf16>
    %cst_148 = arith.constant dense<0.000000e+00> : vector<2x128xf32>
    %435 = tpu.matmul %433, %434, %cst_148 {dimension_numbers = #tpu.dot_dimension_numbers<[1], [0], [0], [1], [0, 0, 1, 1], [], []>} : vector<2x32xbf16>, vector<32x128xbf16>, vector<2x128xf32> -> vector<2x128xf32>
    %436 = vector.extract_strided_slice %435 {offsets = [0, 0], sizes = [2, 96], strides = [1, 1]} : vector<2x128xf32> to vector<2x96xf32>
    %437 = arith.addf %436, %15 : vector<2x96xf32>
    %438 = arith.truncf %387 : vector<2x32xf32> to vector<2x32xbf16>
    %c0_149 = arith.constant 0 : index
    %c0_150 = arith.constant 0 : index
    %439 = vector.load %arg8[%c0_149, %c0_150] : memref<32x96xbf16, #tpu.memory_space<vmem>>, vector<32x96xbf16>
    %cst_151 = arith.constant dense<0.000000e+00> : vector<2x96xf32>
    %440 = tpu.matmul %438, %439, %cst_151 {dimension_numbers = #tpu.dot_dimension_numbers<[1], [0], [0], [1], [0, 0, 1, 1], [], []>} : vector<2x32xbf16>, vector<32x96xbf16>, vector<2x96xf32> -> vector<2x96xf32>
    %441 = vector.broadcast %20 : vector<1x96xf32> to vector<2x96xf32>
    %442 = arith.addf %440, %441 : vector<2x96xf32>
    %443 = vector.extract_strided_slice %437 {offsets = [0, 0], sizes = [2, 32], strides = [1, 1]} : vector<2x96xf32> to vector<2x32xf32>
    %444 = vector.extract_strided_slice %442 {offsets = [0, 0], sizes = [2, 32], strides = [1, 1]} : vector<2x96xf32> to vector<2x32xf32>
    %445 = arith.addf %443, %444 : vector<2x32xf32>
    %446 = arith.negf %445 : vector<2x32xf32>
    %447 = math.exp %446 : vector<2x32xf32>
    %cst_152 = arith.constant 1.000000e+00 : f32
    %448 = vector.broadcast %cst_152 : f32 to vector<2x32xf32>
    %449 = arith.addf %448, %447 : vector<2x32xf32>
    %450 = arith.divf %448, %449 : vector<2x32xf32>
    %451 = vector.extract_strided_slice %437 {offsets = [0, 32], sizes = [2, 32], strides = [1, 1]} : vector<2x96xf32> to vector<2x32xf32>
    %452 = vector.extract_strided_slice %442 {offsets = [0, 32], sizes = [2, 32], strides = [1, 1]} : vector<2x96xf32> to vector<2x32xf32>
    %453 = arith.addf %451, %452 : vector<2x32xf32>
    %454 = arith.negf %453 : vector<2x32xf32>
    %455 = math.exp %454 : vector<2x32xf32>
    %cst_153 = arith.constant 1.000000e+00 : f32
    %456 = vector.broadcast %cst_153 : f32 to vector<2x32xf32>
    %457 = arith.addf %456, %455 : vector<2x32xf32>
    %458 = arith.divf %456, %457 : vector<2x32xf32>
    %459 = vector.extract_strided_slice %437 {offsets = [0, 64], sizes = [2, 32], strides = [1, 1]} : vector<2x96xf32> to vector<2x32xf32>
    %460 = vector.extract_strided_slice %442 {offsets = [0, 64], sizes = [2, 32], strides = [1, 1]} : vector<2x96xf32> to vector<2x32xf32>
    %461 = arith.mulf %450, %460 : vector<2x32xf32>
    %462 = arith.addf %459, %461 : vector<2x32xf32>
    %463 = math.tanh %462 : vector<2x32xf32>
    %cst_154 = arith.constant 1.000000e+00 : f32
    %464 = vector.broadcast %cst_154 : f32 to vector<2x32xf32>
    %465 = arith.subf %464, %458 : vector<2x32xf32>
    %466 = arith.mulf %465, %463 : vector<2x32xf32>
    %467 = arith.mulf %458, %387 : vector<2x32xf32>
    %468 = arith.addf %466, %467 : vector<2x32xf32>
    %469 = vector.extract_strided_slice %435 {offsets = [0, 96], sizes = [2, 32], strides = [1, 1]} : vector<2x128xf32> to vector<2x32xf32>
    %470 = arith.addf %469, %19 : vector<2x32xf32>
    %471 = arith.truncf %468 : vector<2x32xf32> to vector<2x32xbf16>
    %c0_155 = arith.constant 0 : index
    %c0_156 = arith.constant 0 : index
    %472 = vector.load %arg10[%c0_155, %c0_156] : memref<32x32xbf16, #tpu.memory_space<vmem>>, vector<32x32xbf16>
    %cst_157 = arith.constant dense<0.000000e+00> : vector<2x32xf32>
    %473 = tpu.matmul %471, %472, %cst_157 {dimension_numbers = #tpu.dot_dimension_numbers<[1], [0], [0], [1], [0, 0, 1, 1], [], []>} : vector<2x32xbf16>, vector<32x32xbf16>, vector<2x32xf32> -> vector<2x32xf32>
    %474 = arith.addf %470, %473 : vector<2x32xf32>
    %c6 = arith.constant 6 : index
    %c0_158 = arith.constant 0 : index
    %c0_159 = arith.constant 0 : index
    %475 = vector.load %arg5[%c6, %c0_158, %c0_159] : memref<8x2x32xf32, #tpu.memory_space<vmem>>, vector<1x2x32xf32>
    %476 = vector.shape_cast %475 : vector<1x2x32xf32> to vector<2x32xf32>
    %cst_160 = arith.constant dense<0xFF800000> : vector<2xf32>
    %477 = vector.multi_reduction <maximumf>, %474, %cst_160 [1] : vector<2x32xf32> to vector<2xf32>
    %478 = vector.shape_cast %477 : vector<2xf32> to vector<2x1xf32>
    %479 = vector.broadcast %478 : vector<2x1xf32> to vector<2x32xf32>
    %480 = arith.subf %474, %479 : vector<2x32xf32>
    %481 = math.exp %480 : vector<2x32xf32>
    %cst_161 = arith.constant dense<0.000000e+00> : vector<2xf32>
    %482 = vector.multi_reduction <add>, %481, %cst_161 [1] : vector<2x32xf32> to vector<2xf32>
    %483 = vector.shape_cast %482 : vector<2xf32> to vector<2x1xf32>
    %484 = math.log %483 : vector<2x1xf32>
    %485 = arith.addf %484, %478 : vector<2x1xf32>
    %486 = arith.mulf %474, %476 : vector<2x32xf32>
    %cst_162 = arith.constant dense<0.000000e+00> : vector<2xf32>
    %487 = vector.multi_reduction <add>, %486, %cst_162 [1] : vector<2x32xf32> to vector<2xf32>
    %488 = vector.shape_cast %487 : vector<2xf32> to vector<2x1xf32>
    %489 = arith.subf %485, %488 : vector<2x1xf32>
    %cst_163 = arith.constant dense<0.000000e+00> : vector<1xf32>
    %490 = vector.multi_reduction <add>, %489, %cst_163 [0] : vector<2x1xf32> to vector<1xf32>
    %491 = vector.shape_cast %490 : vector<1xf32> to vector<1x1xf32>
    %492 = arith.addf %411, %491 : vector<1x1xf32>
    %493 = vector.broadcast %478 : vector<2x1xf32> to vector<2x32xf32>
    %494 = arith.cmpf oeq, %474, %493 : vector<2x32xf32>
    %c32_i32_164 = arith.constant 32 : i32
    %495 = vector.broadcast %c32_i32_164 : i32 to vector<2x32xi32>
    %496 = arith.select %494, %21, %495 : vector<2x32xi1>, vector<2x32xi32>
    %cst_165 = arith.constant dense<2147483647> : vector<2xi32>
    %497 = vector.multi_reduction <minsi>, %496, %cst_165 [1] : vector<2x32xi32> to vector<2xi32>
    %498 = vector.shape_cast %497 : vector<2xi32> to vector<2x1xi32>
    %499 = vector.broadcast %498 : vector<2x1xi32> to vector<2x32xi32>
    %500 = arith.cmpi eq, %21, %499 : vector<2x32xi32>
    %501 = arith.extui %500 : vector<2x32xi1> to vector<2x32xi32>
    %502 = arith.sitofp %501 : vector<2x32xi32> to vector<2x32xf32>
    %c5_166 = arith.constant 5 : index
    %503 = memref.load %arg1[%c5_166] : memref<7xi32, #tpu.memory_space<smem>>
    %504 = arith.sitofp %503 : i32 to f32
    %505 = vector.broadcast %504 : f32 to vector<2x32xf32>
    %506 = arith.mulf %505, %476 : vector<2x32xf32>
    %cst_167 = arith.constant 1.000000e+00 : f32
    %507 = arith.subf %cst_167, %504 : f32
    %508 = vector.broadcast %507 : f32 to vector<2x32xf32>
    %509 = arith.mulf %508, %502 : vector<2x32xf32>
    %510 = arith.addf %506, %509 : vector<2x32xf32>
    %511 = arith.truncf %510 : vector<2x32xf32> to vector<2x32xbf16>
    %c0_168 = arith.constant 0 : index
    %c0_169 = arith.constant 0 : index
    %512 = vector.load %arg6[%c0_168, %c0_169] : memref<32x32xbf16, #tpu.memory_space<vmem>>, vector<32x32xbf16>
    %cst_170 = arith.constant dense<0.000000e+00> : vector<2x32xf32>
    %513 = tpu.matmul %511, %512, %cst_170 {dimension_numbers = #tpu.dot_dimension_numbers<[1], [0], [0], [1], [0, 0, 1, 1], [], []>} : vector<2x32xbf16>, vector<32x32xbf16>, vector<2x32xf32> -> vector<2x32xf32>
    %514 = arith.truncf %513 : vector<2x32xf32> to vector<2x32xbf16>
    %c0_171 = arith.constant 0 : index
    %c0_172 = arith.constant 0 : index
    %515 = vector.load %arg7[%c0_171, %c0_172] : memref<32x128xbf16, #tpu.memory_space<vmem>>, vector<32x128xbf16>
    %cst_173 = arith.constant dense<0.000000e+00> : vector<2x128xf32>
    %516 = tpu.matmul %514, %515, %cst_173 {dimension_numbers = #tpu.dot_dimension_numbers<[1], [0], [0], [1], [0, 0, 1, 1], [], []>} : vector<2x32xbf16>, vector<32x128xbf16>, vector<2x128xf32> -> vector<2x128xf32>
    %517 = vector.extract_strided_slice %516 {offsets = [0, 0], sizes = [2, 96], strides = [1, 1]} : vector<2x128xf32> to vector<2x96xf32>
    %518 = arith.addf %517, %15 : vector<2x96xf32>
    %519 = arith.truncf %468 : vector<2x32xf32> to vector<2x32xbf16>
    %c0_174 = arith.constant 0 : index
    %c0_175 = arith.constant 0 : index
    %520 = vector.load %arg8[%c0_174, %c0_175] : memref<32x96xbf16, #tpu.memory_space<vmem>>, vector<32x96xbf16>
    %cst_176 = arith.constant dense<0.000000e+00> : vector<2x96xf32>
    %521 = tpu.matmul %519, %520, %cst_176 {dimension_numbers = #tpu.dot_dimension_numbers<[1], [0], [0], [1], [0, 0, 1, 1], [], []>} : vector<2x32xbf16>, vector<32x96xbf16>, vector<2x96xf32> -> vector<2x96xf32>
    %522 = vector.broadcast %20 : vector<1x96xf32> to vector<2x96xf32>
    %523 = arith.addf %521, %522 : vector<2x96xf32>
    %524 = vector.extract_strided_slice %518 {offsets = [0, 0], sizes = [2, 32], strides = [1, 1]} : vector<2x96xf32> to vector<2x32xf32>
    %525 = vector.extract_strided_slice %523 {offsets = [0, 0], sizes = [2, 32], strides = [1, 1]} : vector<2x96xf32> to vector<2x32xf32>
    %526 = arith.addf %524, %525 : vector<2x32xf32>
    %527 = arith.negf %526 : vector<2x32xf32>
    %528 = math.exp %527 : vector<2x32xf32>
    %cst_177 = arith.constant 1.000000e+00 : f32
    %529 = vector.broadcast %cst_177 : f32 to vector<2x32xf32>
    %530 = arith.addf %529, %528 : vector<2x32xf32>
    %531 = arith.divf %529, %530 : vector<2x32xf32>
    %532 = vector.extract_strided_slice %518 {offsets = [0, 32], sizes = [2, 32], strides = [1, 1]} : vector<2x96xf32> to vector<2x32xf32>
    %533 = vector.extract_strided_slice %523 {offsets = [0, 32], sizes = [2, 32], strides = [1, 1]} : vector<2x96xf32> to vector<2x32xf32>
    %534 = arith.addf %532, %533 : vector<2x32xf32>
    %535 = arith.negf %534 : vector<2x32xf32>
    %536 = math.exp %535 : vector<2x32xf32>
    %cst_178 = arith.constant 1.000000e+00 : f32
    %537 = vector.broadcast %cst_178 : f32 to vector<2x32xf32>
    %538 = arith.addf %537, %536 : vector<2x32xf32>
    %539 = arith.divf %537, %538 : vector<2x32xf32>
    %540 = vector.extract_strided_slice %518 {offsets = [0, 64], sizes = [2, 32], strides = [1, 1]} : vector<2x96xf32> to vector<2x32xf32>
    %541 = vector.extract_strided_slice %523 {offsets = [0, 64], sizes = [2, 32], strides = [1, 1]} : vector<2x96xf32> to vector<2x32xf32>
    %542 = arith.mulf %531, %541 : vector<2x32xf32>
    %543 = arith.addf %540, %542 : vector<2x32xf32>
    %544 = math.tanh %543 : vector<2x32xf32>
    %cst_179 = arith.constant 1.000000e+00 : f32
    %545 = vector.broadcast %cst_179 : f32 to vector<2x32xf32>
    %546 = arith.subf %545, %539 : vector<2x32xf32>
    %547 = arith.mulf %546, %544 : vector<2x32xf32>
    %548 = arith.mulf %539, %468 : vector<2x32xf32>
    %549 = arith.addf %547, %548 : vector<2x32xf32>
    %550 = vector.extract_strided_slice %516 {offsets = [0, 96], sizes = [2, 32], strides = [1, 1]} : vector<2x128xf32> to vector<2x32xf32>
    %551 = arith.addf %550, %19 : vector<2x32xf32>
    %552 = arith.truncf %549 : vector<2x32xf32> to vector<2x32xbf16>
    %c0_180 = arith.constant 0 : index
    %c0_181 = arith.constant 0 : index
    %553 = vector.load %arg10[%c0_180, %c0_181] : memref<32x32xbf16, #tpu.memory_space<vmem>>, vector<32x32xbf16>
    %cst_182 = arith.constant dense<0.000000e+00> : vector<2x32xf32>
    %554 = tpu.matmul %552, %553, %cst_182 {dimension_numbers = #tpu.dot_dimension_numbers<[1], [0], [0], [1], [0, 0, 1, 1], [], []>} : vector<2x32xbf16>, vector<32x32xbf16>, vector<2x32xf32> -> vector<2x32xf32>
    %555 = arith.addf %551, %554 : vector<2x32xf32>
    %c7 = arith.constant 7 : index
    %c0_183 = arith.constant 0 : index
    %c0_184 = arith.constant 0 : index
    %556 = vector.load %arg5[%c7, %c0_183, %c0_184] : memref<8x2x32xf32, #tpu.memory_space<vmem>>, vector<1x2x32xf32>
    %557 = vector.shape_cast %556 : vector<1x2x32xf32> to vector<2x32xf32>
    %cst_185 = arith.constant dense<0xFF800000> : vector<2xf32>
    %558 = vector.multi_reduction <maximumf>, %555, %cst_185 [1] : vector<2x32xf32> to vector<2xf32>
    %559 = vector.shape_cast %558 : vector<2xf32> to vector<2x1xf32>
    %560 = vector.broadcast %559 : vector<2x1xf32> to vector<2x32xf32>
    %561 = arith.subf %555, %560 : vector<2x32xf32>
    %562 = math.exp %561 : vector<2x32xf32>
    %cst_186 = arith.constant dense<0.000000e+00> : vector<2xf32>
    %563 = vector.multi_reduction <add>, %562, %cst_186 [1] : vector<2x32xf32> to vector<2xf32>
    %564 = vector.shape_cast %563 : vector<2xf32> to vector<2x1xf32>
    %565 = math.log %564 : vector<2x1xf32>
    %566 = arith.addf %565, %559 : vector<2x1xf32>
    %567 = arith.mulf %555, %557 : vector<2x32xf32>
    %cst_187 = arith.constant dense<0.000000e+00> : vector<2xf32>
    %568 = vector.multi_reduction <add>, %567, %cst_187 [1] : vector<2x32xf32> to vector<2xf32>
    %569 = vector.shape_cast %568 : vector<2xf32> to vector<2x1xf32>
    %570 = arith.subf %566, %569 : vector<2x1xf32>
    %cst_188 = arith.constant dense<0.000000e+00> : vector<1xf32>
    %571 = vector.multi_reduction <add>, %570, %cst_188 [0] : vector<2x1xf32> to vector<1xf32>
    %572 = vector.shape_cast %571 : vector<1xf32> to vector<1x1xf32>
    %573 = arith.addf %492, %572 : vector<1x1xf32>
    %cst_189 = arith.constant 0.0714285746 : f32
    %574 = vector.broadcast %cst_189 : f32 to vector<1x1xf32>
    %575 = arith.mulf %573, %574 : vector<1x1xf32>
    %c0_190 = arith.constant 0 : index
    %c0_191 = arith.constant 0 : index
    %576 = vector.load %arg14[%c0_190, %c0_191] : memref<1x1xf32, #tpu.memory_space<vmem>>, vector<1x1xf32>
    tpu.vector_store %arg14[%c0_190, %c0_191], %575 {strides = array<i32>} : memref<1x1xf32, #tpu.memory_space<vmem>>, vector<1x1xf32>,
    return
  }
  func.func @transform_0(%arg0: i32, %arg1: memref<7xi32, #tpu.memory_space<smem>>) -> (i32, i32) {
    %c0_i32 = arith.constant 0 : i32
    %c0_i32_0 = arith.constant 0 : i32
    %c0_i32_1 = arith.constant 0 : i32
    return %c0_i32, %c0_i32_0 : i32, i32
  }
  func.func @transform_1(%arg0: i32, %arg1: memref<7xi32, #tpu.memory_space<smem>>) -> (i32, i32) {
    %c0_i32 = arith.constant 0 : i32
    %c0_i32_0 = arith.constant 0 : i32
    %c0_i32_1 = arith.constant 0 : i32
    return %c0_i32, %c0_i32_0 : i32, i32
  }
  func.func @transform_2(%arg0: i32, %arg1: memref<7xi32, #tpu.memory_space<smem>>) -> (i32, i32) {
    %c0_i32 = arith.constant 0 : i32
    %c0_i32_0 = arith.constant 0 : i32
    %c0_i32_1 = arith.constant 0 : i32
    return %c0_i32, %c0_i32_0 : i32, i32
  }
  func.func @transform_3(%arg0: i32, %arg1: memref<7xi32, #tpu.memory_space<smem>>) -> (i32, i32, i32) {
    %c0_i32 = arith.constant 0 : i32
    %c0_i32_0 = arith.constant 0 : i32
    %c0_i32_1 = arith.constant 0 : i32
    %c0_i32_2 = arith.constant 0 : i32
    return %c0_i32, %c0_i32_0, %c0_i32_1 : i32, i32, i32
  }
  func.func @transform_4(%arg0: i32, %arg1: memref<7xi32, #tpu.memory_space<smem>>) -> (i32, i32) {
    %c0_i32 = arith.constant 0 : i32
    %c0_i32_0 = arith.constant 0 : i32
    %c0_i32_1 = arith.constant 0 : i32
    return %c0_i32, %c0_i32_0 : i32, i32
  }
  func.func @transform_5(%arg0: i32, %arg1: memref<7xi32, #tpu.memory_space<smem>>) -> (i32, i32) {
    %c0_i32 = arith.constant 0 : i32
    %c0_i32_0 = arith.constant 0 : i32
    %c0_i32_1 = arith.constant 0 : i32
    return %c0_i32, %c0_i32_0 : i32, i32
  }
  func.func @transform_6(%arg0: i32, %arg1: memref<7xi32, #tpu.memory_space<smem>>) -> (i32, i32) {
    %c0_i32 = arith.constant 0 : i32
    %c0_i32_0 = arith.constant 0 : i32
    %c0_i32_1 = arith.constant 0 : i32
    return %c0_i32, %c0_i32_0 : i32, i32
  }
  func.func @transform_7(%arg0: i32, %arg1: memref<7xi32, #tpu.memory_space<smem>>) -> (i32, i32) {
    %c0_i32 = arith.constant 0 : i32
    %c0_i32_0 = arith.constant 0 : i32
    %c0_i32_1 = arith.constant 0 : i32
    return %c0_i32, %c0_i32_0 : i32, i32
  }
  func.func @transform_8(%arg0: i32, %arg1: memref<7xi32, #tpu.memory_space<smem>>) -> (i32, i32) {
    %c0_i32 = arith.constant 0 : i32
    %c0_i32_0 = arith.constant 0 : i32
    %c0_i32_1 = arith.constant 0 : i32
    return %c0_i32, %c0_i32_0 : i32, i32
  }
  func.func @transform_9(%arg0: i32, %arg1: memref<7xi32, #tpu.memory_space<smem>>) -> (i32, i32) {
    %c0_i32 = arith.constant 0 : i32
    %c0_i32_0 = arith.constant 0 : i32
    %c0_i32_1 = arith.constant 0 : i32
    return %c0_i32, %c0_i32_0 : i32, i32
  }
  func.func @transform_10(%arg0: i32, %arg1: memref<7xi32, #tpu.memory_space<smem>>) -> (i32, i32) {
    %c0_i32 = arith.constant 0 : i32
    %c0_i32_0 = arith.constant 0 : i32
    %c0_i32_1 = arith.constant 0 : i32
    return %c0_i32, %c0_i32_0 : i32, i32
  }
  func.func @transform_11(%arg0: i32, %arg1: memref<7xi32, #tpu.memory_space<smem>>) -> (i32, i32) {
    %c0_i32 = arith.constant 0 : i32
    %c0_i32_0 = arith.constant 0 : i32
    %c0_i32_1 = arith.constant 0 : i32
    return %c0_i32, %c0_i32_0 : i32, i32
  }
  func.func @transform_12(%arg0: i32, %arg1: memref<7xi32, #tpu.memory_space<smem>>) -> (i32, i32) {
    %c0_i32 = arith.constant 0 : i32
    %c0_i32_0 = arith.constant 0 : i32
    %c0_i32_1 = arith.constant 0 : i32
    return %c0_i32, %c0_i32_0 : i32, i32
  }
}

</mosaic_0001>

<bundles_post_ra>
// kernel: tcn_model_forward.1
= control target key start
LH: loop header
LB: loop body
LE: loop exit
PB: predicated region body
PF: predicated region fallthrough
CT: control target
= control target key end

     0   :  { %s1758_s28 = smov [#allocation3]   ;;  %s2313_s0 = inlined_call_operand.vmem [shape: s32[7], index: 0, kind: input, shape index: {}]   ;;  %s2314_s1 = inlined_call_operand.vmem [shape: f32[2,96], index: 1, kind: input, shape index: {}]   ;;  %s2315_s2 = inlined_call_operand.vmem [shape: bf16[96,32], index: 2, kind: input, shape index: {}]   ;;  %s2316_s3 = inlined_call_operand.vmem [shape: f32[1,32], index: 3, kind: input, shape index: {}]   ;;  %s2317_s4 = inlined_call_operand.vmem [shape: f32[8,2,32], index: 4, kind: input, shape index: {}]   ;;  %s2318_s5 = inlined_call_operand.vmem [shape: bf16[32,32], index: 5, kind: input, shape index: {}]   ;;  %s2319_s6 = inlined_call_operand.vmem [shape: bf16[32,128], index: 6, kind: input, shape index: {}]   ;;  %s2320_s7 = inlined_call_operand.vmem [shape: bf16[32,96], index: 7, kind: input, shape index: {}]   ;;  %s2321_s8 = inlined_call_operand.vmem [shape: bf16[32,128], index: 8, kind: input, shape index: {}]   ;;  %s2322_s9 = inlined_call_operand.vmem [shape: bf16[32,32], index: 9, kind: input, shape index: {}]   ;;  %s2323_s10 = inlined_call_operand.vmem [shape: f32[1,96], index: 10, kind: input, shape index: {}]   ;;  %s2324_s11 = inlined_call_operand.vmem [shape: f32[1,96], index: 11, kind: input, shape index: {}]   ;;  %s2325_s12 = inlined_call_operand.vmem [shape: f32[1,32], index: 12, kind: input, shape index: {}]   ;;  %s2326_s13 = inlined_call_operand.hbm [shape: f32[1,1], index: 13, kind: output, shape index: {}]  }
   0x1   :  { %s19_s27 = sshll.u32 %s2313_s0, 4  ;;  %s20_s27 = int_to_ptr.vmem [resolvable:$true] %s19_s27 }
   0x2   :  { %22 = dma.vmem_to_smem %s20_s27, 16, %s1758_s28, [#allocation2] }
   0x3   :  { %1754 = dma.done.wait [#allocation2], 16 }
   0x4   :  { %1755 = vsyncadd [#allocation2], 4294967280 }
   0x5   :  { %25 = sfence }
   0x6   :  { %v1625_v0 = vld [vmem:[%s2315_s2 + $0x28] sm:$0xff]  ;;  %v1624_v2 = vld [vmem:[%s2315_s2 + $0x20] sm:$0xff] }
   0x7   :  { %v1843_v1 = vld [vmem:[%s2318_s5 + $0x8] sm:$0xff]  ;;  %112 = vmatpush.bf16.msra.mxu0 %v1625_v0  ;;  %v1851_v3 = vld [vmem:[%s2318_s5] sm:$0xff] }
   0x8   :  { %200 = vmatpush.bf16.msra.mxu2 %v1843_v1  ;;  %v173_v4 = vld [vmem:[%s2317_s4] sm:$0x3]  ;;  %v1860_v5 = vld [vmem:[%s2319_s6 + $0x8] sm:$0xff] }
   0x9   :  { %233 = vmatpush.bf16.msra.mxu3 %v1860_v5 }
   0xa   :  { %26 = vsyncpa [#allocation5], 0  ;;  %v1623_v6 = vld [vmem:[%s2315_s2 + $0x18] sm:$0xff]  ;;  %v174_v7 = vpack.c.bf16 %v173_v4, %v173_v4  ;;  %vm141_vm0 = vcmask 261120   ;;  %v1622_v8 = vld [vmem:[%s2315_s2 + $0x10] sm:$0xff]  ;;  %vm106_vm1 = vcmask 785408  }
   0xb   :  { %113 = vmatpush.bf16.msra.mxu0 %v1624_v2  ;;  %v1621_v9 = vld [vmem:[%s2315_s2 + $0x8] sm:$0xff]  ;;  %v1620_v10 = vld [vmem:[%s2315_s2] sm:$0xff]  ;;  %s1759_s22 = smov 64   ;;  %s1761_s5 = smov 32   ;;  %vm360_vm6 = vcmask 1042176  }
   0xc   :  { %201 = vmatpush.bf16.msra.mxu2 %v1851_v3  ;;  %v52_v11 = vld [vmem:[%s2314_s1] sm:$0x3]  ;;  %v1627_v13 = vld [vmem:[%s2321_s8 + $0x8] sm:$0xff]  ;;  %s1581_s17 = sld [smem:[#allocation3 + $0x1]] }
   0xd   :  { %v53_v12 = vpack.c.bf16 %v52_v11, %v52_v11  ;;  %v1887_v14 = vld [vmem:[%s2319_s6] sm:$0xff]  ;;  %151 = vmatpush.bf16.msra.mxu1 %v1627_v13  ;;  %v1901_v16 = vld [vmem:[%s2320_s7 + $0x8] sm:$0xff]  ;;  %s1589_s18 = sld [smem:[#allocation3 + $0x2]] }
   0xe   :  { %234 = vmatpush.bf16.msra.mxu3 %v1887_v14  ;;  %v1626_v15 = vld [vmem:[%s2321_s8] sm:$0xff]  ;;  %v1947_v57 = vld [vmem:[%s2322_s9 + $0x8] sm:$0xff]  ;;  %s1605_s26 = sld [smem:[#allocation3 + $0x4]] }
   0xf   :  { %114 = vmatpush.bf16.msra.mxu0 %v1623_v6  ;;  %1543 = vmatmul.msk.bf16.vlgmr.msra.gmra.mxu2 %vm141_vm0, %v174_v7  ;;  %v1907_v17 = vld [vmem:[%s2320_s7] sm:$0xff] }
  0x10   :  { %v1642_v20 = vld [vmem:[%s2316_s3] ss:$0 sm:$0xff]  ;;  %346 = vmatpush.bf16.msrb.mxu2 %v1947_v57  ;;  %s1597_s3 = sld [smem:[#allocation3 + $0x3]] }
  0x11   :  { %152 = vmatpush.bf16.msra.mxu1 %v1626_v15  ;;  %v1929_v31 = vld [vmem:[%s2324_s11] ss:$0 sm:$0xff] }
  0x12   :  { %440 = vmatpush.bf16.msrb.mxu3 %v1843_v1  ;;  %v1643_v35 = vld [vmem:[%s2323_s10] ss:$0 sm:$0xff]  ;;  %s1760_s10 = smov 96   ;;  %s603_s0 = scvt.s32.f32 %s1581_s17 }
  0x13   :  { %115 = vmatpush.bf16.msra.mxu0 %v1622_v8  ;;  %v1953_v58 = vld [vmem:[%s2322_s9] sm:$0xff]  ;;  %s783_s19 = scvt.s32.f32 %s1589_s18  ;;  %s1492_s18 = sshll.u32 %s2326_s13, 4  ;;  %s1493_s18 = int_to_ptr.hbm [resolvable:$true] %s1492_s18 }
  0x14   :  { %347 = vmatpush.bf16.msrb.mxu2 %v1953_v58  ;;  %v1645_v4 = vld [vmem:[%s2325_s12] ss:$0 sm:$0xff]  ;;  %s422_s12 = sld [smem:[#allocation3]]  ;;  %s1143_s27 = scvt.s32.f32 %s1605_s26 }
  0x15   :  { %266 = vmatpush.bf16.msrb.mxu1 %v1901_v16  ;;  %s606_s1 = ssub.f32 1.0, %s603_s0 }
  0x16   :  { %441 = vmatpush.bf16.msrb.mxu3 %v1851_v3  ;;  %s786_s20 = ssub.f32 1.0, %s783_s19  ;;  %s963_s7 = scvt.s32.f32 %s1597_s3 }
  0x17   :  { %116 = vmatpush.bf16.msra.mxu0 %v1621_v9  ;;  %s1146_s28 = ssub.f32 1.0, %s1143_s27 }
  0x18   :  { %531 = vmatpush.bf16.msra.mxu2 %v1947_v57  ;;  %s966_s23 = ssub.f32 1.0, %s963_s7 }
  0x19   :  { %267 = vmatpush.bf16.msrb.mxu1 %v1907_v17 }
  0x1a   :  { %s423_s30 = scvt.s32.f32 %s422_s12 }
  0x1b   :  { %117 = vmatpush.bf16.msra.mxu0 %v1620_v10 }
  0x1c   :  { %532 = vmatpush.bf16.msra.mxu2 %v1953_v58  ;;  %s426_s14 = ssub.f32 1.0, %s423_s30 }
  0x1e   :  { %1525 = vmatmul.msk.bf16.vlgmr.msra.gmra.mxu0 %vm106_vm1, %v53_v12  ;;  %v171_v12 = vlaneseq }
  0x1f   :  { %457 = vmatpush.bf16.msrb.mxu0 %v1860_v5 }
  0x20   :  { %v1977_v15 = vand.u32 127, %v171_v12 }
  0x23   :  { %458 = vmatpush.bf16.msrb.mxu0 %v1887_v14 }
  0x27   :  { %637 = vmatpush.bf16.msra.mxu0 %v1860_v5 }
  0x2b   :  { %638 = vmatpush.bf16.msra.mxu0 %v1887_v14 }
  0x92   :  { %v203_v18 = vpop.f32.mrf.mxu2 }
  0x93   :  { %v207_v19 = vpack.c.bf16 %v203_v18, %v203_v18 }
  0x95   :  { %1552 = vmatmul.msk.bf16.vlgmr.msra.gmra.mxu3 %vm141_vm0, %v207_v19 }
  0x96   :  { %620 = vmatpush.bf16.msra.mxu3 %v1843_v1 }
  0x9a   :  { %v205_v21 = vpop.f32.mrf.mxu2  ;;  %621 = vmatpush.bf16.msra.mxu3 %v1851_v3 }
  0x9b   :  { %v119_v22 = vpop.f32.mrf.mxu0 }
  0x9c   :  { %v120_v23 = vadd.f32 %v1642_v20, %v119_v22 }
  0x9e   :  { %v123_v24 = vmax.f32 %v120_v23, 0.0 }
  0xa0   :  { %v124_v25 = vpack.c.bf16 %v123_v24, %v123_v24 }
  0xa2   :  { %1534 = vmatmul.msk.bf16.vlgmr.msra.gmra.mxu1 %vm141_vm0, %v124_v25 }
  0xa3   :  { %v121_v26 = vpop.f32.mrf.mxu0  ;;  %471 = vmatpush.bf16.msra.mxu1 %v1901_v16 }
  0xa7   :  { %472 = vmatpush.bf16.msra.mxu1 %v1907_v17 }
  0xb2   :  { %1561 = vmatmul.msk.bf16.vlgmr.msrb.gmra.mxu1 %vm141_vm0, %v124_v25 }
  0xb3   :  { %651 = vmatpush.bf16.msrb.mxu1 %v1901_v16 }
  0xb7   :  { %652 = vmatpush.bf16.msrb.mxu1 %v1907_v17 }
 0x118   :  { %v1922_v27 = vpop.f32.mrf.mxu3 }
 0x11f   :  { %v1924_v28 = vpop.f32.mrf.mxu1 }
 0x120   :  { %v238_v29 = vpop.f32.mrf.mxu3  ;;  %v1937_v36 = vadd.f32 %v1643_v35, %v1924_v28 }
 0x122   :  { %v240_v37 = vadd.f32 %v1922_v27, %v1937_v36 }
 0x127   :  { %v156_v30 = vpop.f32.mrf.mxu1 }
 0x12f   :  { %v269_v32 = vpop.f32.mrf.mxu1 }
 0x130   :  { %v270_v33 = vadd.f32 %v1929_v31, %v269_v32 }
 0x132   :  { %294 = vrot.lane.b32.xlu0 %v270_v33, %s1759_s22  ;;  %v273_v38 = vadd.f32 %v270_v33, %v240_v37 }
 0x134   :  { %v1562_v39 = vmul.f32 -1.442695, %v273_v38 }
 0x136   :  { %1646 = vpow2.f32 %v1562_v39  ;;  %v1572_v39 = vld [vmem:[%s2317_s4 + $0x2] sm:$0x3] }
 0x137   :  { %v271_v34 = vpop.f32.mrf.mxu1 }
 0x13c   :  { %v1647_v40 = vpop.eup %1646 }
 0x13d   :  { %v277_v41 = vadd.f32 1.0, %v1647_v40  ;;  %v424_v40 = vstv %s423_s30 }
 0x13f   :  { %1648 = vrcp.f32 %v277_v41  ;;  %v289_v47 = vand.u32 2147483648, %v277_v41  ;;  %vm283_vm3 = vweird.f32 %v277_v41  ;;  %v287_v48 = vand.u32 2147483647, %v277_v41 }
 0x141   :  { %v290_v50 = vor.u32 1.1754944e-38, %v289_v47  ;;  %vm288_vm5 = vcmp.eq.f32.partialorder %v287_v48, 8.507059e+37 }
 0x145   :  { %v1649_v42 = vpop.eup %1648 }
 0x146   :  { %v279_v43 = vmul.f32 %v1649_v42, %v277_v41  ;;  %vm284_vm2 = vweird.f32 %v1649_v42 }
 0x147   :  { %vm285_vm4 = vmor %vm283_vm3, %vm284_vm2 }
 0x148   :  { %v280_v44 = vsub.f32 1.0, %v279_v43  ;;  %v425_v43 = vmul.f32 %v1572_v39, %v424_v40 }
 0x14a   :  { %v281_v45 = vmul.f32 %v1649_v42, %v280_v44  ;;  %v1762_v44 = vmov 0.0  }
 0x14c   :  { %v282_v46 = vadd.f32 %v1649_v42, %v281_v45 }
 0x14e   :  { %v286_v49 = vsel %vm285_vm4, %v1649_v42, %v282_v46  ;;  %v427_v42 = vstv %s426_s14 }
 0x14f   :  { %v291_v52 = vsel %vm288_vm5, %v290_v50, %v286_v49 }
 0x150   :  { %v304_v60 = vsub.f32 1.0, %v291_v52 }
 0x1a4   :  { %v295_v51 = vpop.permute.xlu0 %294 }
 0x1a5   :  { %v297_v53 = vmul.f32 %v295_v51, %v291_v52 }
 0x1a7   :  { %299 = vrot.lane.b32.xlu0 %v297_v53, %s1759_s22 }
 0x219   :  { %v300_v54 = vpop.permute.xlu0 %299 }
 0x21a   :  { %v302_v55 = vadd.f32 %v300_v54, %v240_v37 }
 0x21c   :  { %1650 = vtanh.f32 %v302_v55 }
 0x222   :  { %v1651_v56 = vpop.eup %1650 }
 0x223   :  { %306 = vrot.lane.b32.xlu1 %v1651_v56, %s1760_s10 }
 0x22b   :  { %311 = vrot.lane.b32.xlu1 %v123_v24, %s1761_s5 }
 0x295   :  { %v307_v59 = vpop.permute.xlu1 %306 }
 0x296   :  { %v309_v62 = vmul.f32 %v307_v59, %v304_v60 }
 0x29d   :  { %v312_v61 = vpop.permute.xlu1 %311 }
 0x29e   :  { %v314_v63 = vmul.f32 %v312_v61, %v291_v52 }
 0x2a0   :  { %v1958_v0 = vadd.f32 %v314_v63, %v309_v62 }
 0x2a2   :  { %v317_v2 = vpack.c.bf16 %v1958_v0, %v1958_v0 }
 0x2a4   :  { %323 = vrot.lane.b32.xlu2 %v317_v2, %s1760_s10 }
 0x2ac   :  { %166 = vrot.lane.b32.xlu2 %v1645_v4, %s1760_s10 }
 0x2b4   :  { %401 = vrot.lane.b32.xlu2 %v1977_v15, %s1760_s10 }
 0x2fe   :  { %v324_v6 = vpop.permute.xlu2 %323 }
 0x2ff   :  { %1571 = vmatmul.msk.bf16.vlgmr.msrb.gmra.mxu2 %vm141_vm0, %v324_v6  ;;  %1576 = vmatmul.msk.bf16.vlgmr.msra.gmra.mxu1 %vm141_vm0, %v324_v6 }
 0x300   :  { %711 = vmatpush.bf16.msrb.mxu2 %v1947_v57  ;;  %831 = vmatpush.bf16.msra.mxu1 %v1901_v16 }
 0x304   :  { %712 = vmatpush.bf16.msrb.mxu2 %v1953_v58  ;;  %832 = vmatpush.bf16.msra.mxu1 %v1907_v17 }
 0x306   :  { %v167_v11 = vpop.permute.xlu2 %166 }
 0x307   :  { %v1975_v13 = vadd.f32 %v167_v11, %v1924_v28 }
 0x309   :  { %v316_v18 = vadd.f32 %v1922_v27, %v1975_v13 }
 0x30e   :  { %v1989_v23 = vpop.permute.xlu2 %401 }
 0x37c   :  { %v474_v7 = vpop.f32.mrf.mxu1 }
 0x37d   :  { %v475_v22 = vadd.f32 %v1929_v31, %v474_v7 }
 0x382   :  { %v349_v8 = vpop.f32.mrf.mxu2 }
 0x383   :  { %354 = vrot.lane.b32.xlu0 %v349_v8, %s1760_s10 }
 0x384   :  { %v476_v9 = vpop.f32.mrf.mxu1 }
 0x38a   :  { %v351_v10 = vpop.f32.mrf.mxu2 }
 0x3f5   :  { %v355_v19 = vpop.permute.xlu0 %354 }
 0x3f6   :  { %v1983_v20 = vadd.f32 %v355_v19, %v316_v18 }
 0x3f8   :  { %v361_v21 = vsel %vm360_vm6, %v1983_v20, -inf }
 0x3f9   :  { %362 = vmax.xlane.f32.xlu1 %v361_v21 }
 0x412   :  { %499 = vrot.lane.b32.xlu1 %v475_v22, %s1759_s22 }
 0x46c   :  { %v1991_v24 = vpop.xlane.xlu1 %362 }
 0x46d   :  { %vm400_vm7 = vcmp.eq.f32.partialorder %v1983_v20, %v1991_v24 }
 0x46e   :  { %v403_v25 = vsel %vm400_vm7, %v1989_v23, 32 }
 0x46f   :  { %v404_v26 = vsel %vm360_vm6, %v403_v25, 2147483647 }
 0x470   :  { %v406_v27 = vshra.s32 %v404_v26, 16  ;;  %v405_v29 = vand.u32 65535, %v404_v26 }
 0x472   :  { %v408_v28 = vcvt.s32.f32 %v406_v27  ;;  %v407_v32 = vcvt.s32.f32 %v405_v29 }
 0x474   :  { %409 = vmin.xlane.f32.xlu0 %v408_v28 }
 0x484   :  { %v500_v10 = vpop.permute.xlu1 %499 }
 0x4e7   :  { %v410_v30 = vpop.xlane.xlu0 %409 }
 0x4e8   :  { %vm411_vm8 = vcmp.eq.f32.partialorder %v408_v28, %v410_v30  ;;  %v416_v34 = vcvt.f32.s32 %v410_v30 }
 0x4e9   :  { %v412_v33 = vsel %vm411_vm8, %v407_v32, inf }
 0x4ea   :  { %413 = vmin.xlane.f32.xlu2 %v412_v33  ;;  %v417_v37 = vshll.u32 %v416_v34, 16 }
 0x55d   :  { %v414_v35 = vpop.xlane.xlu2 %413 }
 0x55e   :  { %v415_v38 = vcvt.f32.s32 %v414_v35 }
 0x560   :  { %v418_v41 = vadd.s32 %v417_v37, %v415_v38 }
 0x562   :  { %vm419_vm9 = vcmp.eq.s32.totalorder %v1977_v15, %v418_v41 }
 0x563   :  { %v1573_v45 = vsel %vm419_vm9, 1.0, %v1762_v44 }
 0x564   :  { %v428_v46 = vmul.f32 %v1573_v45, %v427_v42 }
 0x566   :  { %v429_v47 = vadd.f32 %v428_v46, %v425_v43 }
 0x568   :  { %v430_v48 = vpack.c.bf16 %v429_v47, %v429_v47 }
 0x56a   :  { %1574 = vmatmul.msk.bf16.vlgmr.msrb.gmra.mxu3 %vm141_vm0, %v430_v48 }
 0x56b   :  { %800 = vmatpush.bf16.msrb.mxu3 %v1843_v1 }
 0x56f   :  { %801 = vmatpush.bf16.msrb.mxu3 %v1851_v3 }
 0x5ed   :  { %v443_v49 = vpop.f32.mrf.mxu3 }
 0x5ee   :  { %v447_v50 = vpack.c.bf16 %v443_v49, %v443_v49 }
 0x5f0   :  { %1575 = vmatmul.msk.bf16.vlgmr.msrb.gmra.mxu0 %vm141_vm0, %v447_v50 }
 0x5f1   :  { %817 = vmatpush.bf16.msrb.mxu0 %v1860_v5 }
 0x5f5   :  { %v445_v51 = vpop.f32.mrf.mxu3  ;;  %818 = vmatpush.bf16.msrb.mxu0 %v1887_v14 }
 0x66d   :  { %v460_v52 = vpop.f32.mrf.mxu0 }
 0x66e   :  { %v464_v53 = vadd.f32 %v460_v52, %v1937_v36  ;;  %v517_v35 = vadd.f32 %v460_v52, %v1975_v13 }
 0x670   :  { %v478_v54 = vadd.f32 %v475_v22, %v464_v53 }
 0x672   :  { %v1577_v55 = vmul.f32 -1.442695, %v478_v54 }
 0x674   :  { %1652 = vpow2.f32 %v1577_v55  ;;  %v2040_v55 = vld [vmem:[%s2317_s4 + $0x4] sm:$0x3] }
 0x675   :  { %v462_v56 = vpop.f32.mrf.mxu0 }
 0x676   :  { %v604_v56 = vstv %s603_s0 }
 0x67a   :  { %v1653_v59 = vpop.eup %1652 }
 0x67b   :  { %v482_v60 = vadd.f32 1.0, %v1653_v59 }
 0x67d   :  { %1654 = vrcp.f32 %v482_v60  ;;  %v494_v2 = vand.u32 2147483648, %v482_v60  ;;  %v492_v6 = vand.u32 2147483647, %v482_v60  ;;  %vm488_vm11 = vweird.f32 %v482_v60 }
 0x67f   :  { %v495_v8 = vor.u32 1.1754944e-38, %v494_v2  ;;  %vm493_vm13 = vcmp.eq.f32.partialorder %v492_v6, 8.507059e+37 }
 0x683   :  { %v1655_v61 = vpop.eup %1654 }
 0x684   :  { %v484_v62 = vmul.f32 %v1655_v61, %v482_v60  ;;  %vm489_vm10 = vweird.f32 %v1655_v61  ;;  %v607_v60 = vstv %s606_s1 }
 0x685   :  { %vm490_vm12 = vmor %vm488_vm11, %vm489_vm10 }
 0x686   :  { %v485_v63 = vsub.f32 1.0, %v484_v62 }
 0x688   :  { %v486_v4 = vmul.f32 %v1655_v61, %v485_v63 }
 0x68a   :  { %v487_v7 = vadd.f32 %v1655_v61, %v486_v4 }
 0x68c   :  { %v491_v9 = vsel %vm490_vm12, %v1655_v61, %v487_v7  ;;  %v605_v61 = vmul.f32 %v2040_v55, %v604_v56 }
 0x68d   :  { %v496_v11 = vsel %vm493_vm13, %v495_v8, %v491_v9 }
 0x68e   :  { %v502_v12 = vmul.f32 %v500_v10, %v496_v11  ;;  %v509_v22 = vsub.f32 1.0, %v496_v11  ;;  %v515_v26 = vmul.f32 %v496_v11, %v1958_v0 }
 0x690   :  { %504 = vrot.lane.b32.xlu2 %v502_v12, %s1759_s22 }
 0x6ea   :  { %v505_v18 = vpop.permute.xlu2 %504 }
 0x6eb   :  { %v507_v19 = vadd.f32 %v505_v18, %v464_v53 }
 0x6ed   :  { %1656 = vtanh.f32 %v507_v19 }
 0x6f3   :  { %v1657_v21 = vpop.eup %1656 }
 0x6f4   :  { %511 = vrot.lane.b32.xlu0 %v1657_v21, %s1760_s10 }
 0x766   :  { %v512_v25 = vpop.permute.xlu0 %511 }
 0x767   :  { %v514_v27 = vmul.f32 %v512_v25, %v509_v22 }
 0x769   :  { %v2012_v28 = vadd.f32 %v515_v26, %v514_v27 }
 0x76b   :  { %v518_v29 = vpack.c.bf16 %v2012_v28, %v2012_v28 }
 0x76d   :  { %520 = vrot.lane.b32.xlu1 %v518_v29, %s1760_s10 }
 0x7df   :  { %v521_v30 = vpop.permute.xlu1 %520 }
 0x7e0   :  { %1578 = vmatmul.msk.bf16.vlgmr.msra.gmra.mxu2 %vm141_vm0, %v521_v30  ;;  %1584 = vmatmul.msk.bf16.vlgmr.msrb.gmra.mxu1 %vm141_vm0, %v521_v30 }
 0x7e1   :  { %891 = vmatpush.bf16.msra.mxu2 %v1947_v57  ;;  %1011 = vmatpush.bf16.msrb.mxu1 %v1901_v16 }
 0x7e5   :  { %892 = vmatpush.bf16.msra.mxu2 %v1953_v58  ;;  %1012 = vmatpush.bf16.msrb.mxu1 %v1907_v17 }
 0x85d   :  { %v654_v0 = vpop.f32.mrf.mxu1 }
 0x85e   :  { %v655_v40 = vadd.f32 %v1929_v31, %v654_v0 }
 0x863   :  { %v534_v32 = vpop.f32.mrf.mxu2 }
 0x864   :  { %539 = vrot.lane.b32.xlu0 %v534_v32, %s1760_s10 }
 0x865   :  { %v656_v33 = vpop.f32.mrf.mxu1 }
 0x86b   :  { %v536_v34 = vpop.f32.mrf.mxu2 }
 0x8d6   :  { %v540_v37 = vpop.permute.xlu0 %539 }
 0x8d7   :  { %v2025_v38 = vadd.f32 %v540_v37, %v517_v35 }
 0x8d9   :  { %v545_v39 = vsel %vm360_vm6, %v2025_v38, -inf }
 0x8da   :  { %546 = vmax.xlane.f32.xlu2 %v545_v39 }
 0x8f2   :  { %679 = vrot.lane.b32.xlu2 %v655_v40, %s1759_s22 }
 0x94d   :  { %v2031_v41 = vpop.xlane.xlu2 %546 }
 0x94e   :  { %vm582_vm14 = vcmp.eq.f32.partialorder %v2025_v38, %v2031_v41 }
 0x94f   :  { %v583_v42 = vsel %vm582_vm14, %v1989_v23, 32 }
 0x950   :  { %v584_v43 = vsel %vm360_vm6, %v583_v42, 2147483647 }
 0x951   :  { %v586_v45 = vshra.s32 %v584_v43, 16  ;;  %v585_v47 = vand.u32 65535, %v584_v43 }
 0x953   :  { %v588_v46 = vcvt.s32.f32 %v586_v45  ;;  %v587_v49 = vcvt.s32.f32 %v585_v47 }
 0x955   :  { %589 = vmin.xlane.f32.xlu1 %v588_v46  ;;  %v680_v34 = vpop.permute.xlu2 %679 }
 0x9c8   :  { %v590_v48 = vpop.xlane.xlu1 %589 }
 0x9c9   :  { %vm591_vm15 = vcmp.eq.f32.partialorder %v588_v46, %v590_v48  ;;  %v596_v51 = vcvt.f32.s32 %v590_v48 }
 0x9ca   :  { %v592_v50 = vsel %vm591_vm15, %v587_v49, inf }
 0x9cb   :  { %593 = vmin.xlane.f32.xlu0 %v592_v50  ;;  %v597_v53 = vshll.u32 %v596_v51, 16 }
 0xa3e   :  { %v594_v52 = vpop.xlane.xlu0 %593 }
 0xa3f   :  { %v595_v54 = vcvt.f32.s32 %v594_v52 }
 0xa41   :  { %v598_v59 = vadd.s32 %v597_v53, %v595_v54 }
 0xa43   :  { %vm599_vm1 = vcmp.eq.s32.totalorder %v1977_v15, %v598_v59 }
 0xa44   :  { %v1580_v62 = vsel %vm599_vm1, 1.0, %v1762_v44 }
 0xa45   :  { %v608_v63 = vmul.f32 %v1580_v62, %v607_v60 }
 0xa47   :  { %v609_v2 = vadd.f32 %v608_v63, %v605_v61 }
 0xa49   :  { %v610_v4 = vpack.c.bf16 %v609_v2, %v609_v2 }
 0xa4b   :  { %1582 = vmatmul.msk.bf16.vlgmr.msra.gmra.mxu3 %vm141_vm0, %v610_v4 }
 0xa4c   :  { %980 = vmatpush.bf16.msra.mxu3 %v1843_v1 }
 0xa50   :  { %981 = vmatpush.bf16.msra.mxu3 %v1851_v3 }
 0xace   :  { %v623_v6 = vpop.f32.mrf.mxu3 }
 0xacf   :  { %v627_v7 = vpack.c.bf16 %v623_v6, %v623_v6 }
 0xad1   :  { %1583 = vmatmul.msk.bf16.vlgmr.msra.gmra.mxu0 %vm141_vm0, %v627_v7 }
 0xad2   :  { %997 = vmatpush.bf16.msra.mxu0 %v1860_v5 }
 0xad6   :  { %v625_v8 = vpop.f32.mrf.mxu3  ;;  %998 = vmatpush.bf16.msra.mxu0 %v1887_v14 }
 0xb4e   :  { %v640_v9 = vpop.f32.mrf.mxu0 }
 0xb4f   :  { %v644_v10 = vadd.f32 %v640_v9, %v1937_v36  ;;  %v697_v54 = vadd.f32 %v640_v9, %v1975_v13 }
 0xb51   :  { %v658_v11 = vadd.f32 %v655_v40, %v644_v10 }
 0xb53   :  { %v1585_v12 = vmul.f32 -1.442695, %v658_v11 }
 0xb55   :  { %1658 = vpow2.f32 %v1585_v12 }
 0xb56   :  { %v642_v18 = vpop.f32.mrf.mxu0 }
 0xb5b   :  { %v1659_v19 = vpop.eup %1658 }
 0xb5c   :  { %v662_v21 = vadd.f32 1.0, %v1659_v19 }
 0xb5e   :  { %1660 = vrcp.f32 %v662_v21  ;;  %v674_v27 = vand.u32 2147483648, %v662_v21  ;;  %v672_v30 = vand.u32 2147483647, %v662_v21  ;;  %vm668_vm3 = vweird.f32 %v662_v21 }
 0xb60   :  { %v675_v32 = vor.u32 1.1754944e-38, %v674_v27  ;;  %vm673_vm5 = vcmp.eq.f32.partialorder %v672_v30, 8.507059e+37 }
 0xb64   :  { %v1661_v22 = vpop.eup %1660 }
 0xb65   :  { %v664_v25 = vmul.f32 %v1661_v22, %v662_v21  ;;  %vm669_vm2 = vweird.f32 %v1661_v22  ;;  %v2083_v21 = vld [vmem:[%s2317_s4 + $0x6] sm:$0x3] }
 0xb66   :  { %vm670_vm4 = vmor %vm668_vm3, %vm669_vm2 }
 0xb67   :  { %v665_v26 = vsub.f32 1.0, %v664_v25 }
 0xb69   :  { %v666_v29 = vmul.f32 %v1661_v22, %v665_v26  ;;  %v787_v26 = vstv %s786_s20 }
 0xb6b   :  { %v667_v0 = vadd.f32 %v1661_v22, %v666_v29 }
 0xb6d   :  { %v671_v33 = vsel %vm670_vm4, %v1661_v22, %v667_v0  ;;  %v784_v22 = vstv %s783_s19 }
 0xb6e   :  { %v676_v35 = vsel %vm673_vm5, %v675_v32, %v671_v33  ;;  %v785_v27 = vmul.f32 %v2083_v21, %v784_v22 }
 0xb6f   :  { %v682_v37 = vmul.f32 %v680_v34, %v676_v35  ;;  %v689_v43 = vsub.f32 1.0, %v676_v35  ;;  %v695_v46 = vmul.f32 %v676_v35, %v2012_v28 }
 0xb71   :  { %684 = vrot.lane.b32.xlu1 %v682_v37, %s1759_s22 }
 0xbe3   :  { %v685_v39 = vpop.permute.xlu1 %684 }
 0xbe4   :  { %v687_v40 = vadd.f32 %v685_v39, %v644_v10 }
 0xbe6   :  { %1662 = vtanh.f32 %v687_v40 }
 0xbec   :  { %v1663_v42 = vpop.eup %1662 }
 0xbed   :  { %691 = vrot.lane.b32.xlu0 %v1663_v42, %s1760_s10 }
 0xc5f   :  { %v692_v45 = vpop.permute.xlu0 %691 }
 0xc60   :  { %v694_v47 = vmul.f32 %v692_v45, %v689_v43 }
 0xc62   :  { %v2055_v48 = vadd.f32 %v695_v46, %v694_v47 }
 0xc64   :  { %v698_v49 = vpack.c.bf16 %v2055_v48, %v2055_v48 }
 0xc66   :  { %700 = vrot.lane.b32.xlu2 %v698_v49, %s1760_s10 }
 0xcc0   :  { %v701_v50 = vpop.permute.xlu2 %700 }
 0xcc1   :  { %1586 = vmatmul.msk.bf16.vlgmr.msrb.gmra.mxu2 %vm141_vm0, %v701_v50  ;;  %1592 = vmatmul.msk.bf16.vlgmr.msra.gmra.mxu1 %vm141_vm0, %v701_v50 }
 0xcc2   :  { %1071 = vmatpush.bf16.msrb.mxu2 %v1947_v57  ;;  %1191 = vmatpush.bf16.msra.mxu1 %v1901_v16 }
 0xcc6   :  { %1072 = vmatpush.bf16.msrb.mxu2 %v1953_v58  ;;  %1192 = vmatpush.bf16.msra.mxu1 %v1907_v17 }
 0xd3e   :  { %v834_v28 = vpop.f32.mrf.mxu1 }
 0xd3f   :  { %v835_v61 = vadd.f32 %v1929_v31, %v834_v28 }
 0xd44   :  { %v714_v51 = vpop.f32.mrf.mxu2 }
 0xd45   :  { %719 = vrot.lane.b32.xlu0 %v714_v51, %s1760_s10 }
 0xd46   :  { %v836_v52 = vpop.f32.mrf.mxu1 }
 0xd4c   :  { %v716_v53 = vpop.f32.mrf.mxu2 }
 0xdb7   :  { %v720_v56 = vpop.permute.xlu0 %719 }
 0xdb8   :  { %v2068_v59 = vadd.f32 %v720_v56, %v697_v54 }
 0xdba   :  { %v725_v60 = vsel %vm360_vm6, %v2068_v59, -inf }
 0xdbb   :  { %726 = vmax.xlane.f32.xlu1 %v725_v60 }
 0xdd4   :  { %859 = vrot.lane.b32.xlu1 %v835_v61, %s1759_s22 }
 0xe2e   :  { %v2074_v62 = vpop.xlane.xlu1 %726 }
 0xe2f   :  { %vm762_vm7 = vcmp.eq.f32.partialorder %v2068_v59, %v2074_v62 }
 0xe30   :  { %v763_v63 = vsel %vm762_vm7, %v1989_v23, 32 }
 0xe31   :  { %v764_v2 = vsel %vm360_vm6, %v763_v63, 2147483647 }
 0xe32   :  { %v766_v4 = vshra.s32 %v764_v2, 16  ;;  %v765_v7 = vand.u32 65535, %v764_v2 }
 0xe34   :  { %v768_v6 = vcvt.s32.f32 %v766_v4  ;;  %v767_v9 = vcvt.s32.f32 %v765_v7 }
 0xe36   :  { %769 = vmin.xlane.f32.xlu2 %v768_v6 }
 0xe46   :  { %v860_v60 = vpop.permute.xlu1 %859 }
 0xea9   :  { %v770_v8 = vpop.xlane.xlu2 %769 }
 0xeaa   :  { %vm771_vm8 = vcmp.eq.f32.partialorder %v768_v6, %v770_v8  ;;  %v776_v11 = vcvt.f32.s32 %v770_v8 }
 0xeab   :  { %v772_v10 = vsel %vm771_vm8, %v767_v9, inf }
 0xeac   :  { %773 = vmin.xlane.f32.xlu0 %v772_v10  ;;  %v777_v18 = vshll.u32 %v776_v11, 16 }
 0xf1f   :  { %v774_v12 = vpop.xlane.xlu0 %773 }
 0xf20   :  { %v775_v19 = vcvt.f32.s32 %v774_v12 }
 0xf22   :  { %v778_v25 = vadd.s32 %v777_v18, %v775_v19 }
 0xf24   :  { %vm779_vm9 = vcmp.eq.s32.totalorder %v1977_v15, %v778_v25 }
 0xf25   :  { %v1588_v29 = vsel %vm779_vm9, 1.0, %v1762_v44 }
 0xf26   :  { %v788_v30 = vmul.f32 %v1588_v29, %v787_v26 }
 0xf28   :  { %v789_v0 = vadd.f32 %v788_v30, %v785_v27 }
 0xf2a   :  { %v790_v32 = vpack.c.bf16 %v789_v0, %v789_v0 }
 0xf2c   :  { %1590 = vmatmul.msk.bf16.vlgmr.msrb.gmra.mxu3 %vm141_vm0, %v790_v32 }
 0xf2d   :  { %1160 = vmatpush.bf16.msrb.mxu3 %v1843_v1 }
 0xf31   :  { %1161 = vmatpush.bf16.msrb.mxu3 %v1851_v3 }
 0xfaf   :  { %v803_v33 = vpop.f32.mrf.mxu3 }
 0xfb0   :  { %v807_v34 = vpack.c.bf16 %v803_v33, %v803_v33 }
 0xfb2   :  { %1591 = vmatmul.msk.bf16.vlgmr.msrb.gmra.mxu0 %vm141_vm0, %v807_v34 }
 0xfb3   :  { %1177 = vmatpush.bf16.msrb.mxu0 %v1860_v5 }
 0xfb7   :  { %v805_v35 = vpop.f32.mrf.mxu3  ;;  %1178 = vmatpush.bf16.msrb.mxu0 %v1887_v14 }
0x102f   :  { %v820_v37 = vpop.f32.mrf.mxu0 }
0x1030   :  { %v824_v39 = vadd.f32 %v820_v37, %v1937_v36  ;;  %v877_v26 = vadd.f32 %v820_v37, %v1975_v13 }
0x1032   :  { %v838_v40 = vadd.f32 %v835_v61, %v824_v39 }
0x1034   :  { %v1593_v42 = vmul.f32 -1.442695, %v838_v40 }
0x1036   :  { %1664 = vpow2.f32 %v1593_v42 }
0x1037   :  { %v822_v43 = vpop.f32.mrf.mxu0 }
0x103c   :  { %v1665_v45 = vpop.eup %1664 }
0x103d   :  { %v842_v46 = vadd.f32 1.0, %v1665_v45 }
0x103f   :  { %1666 = vrcp.f32 %v842_v46  ;;  %v854_v28 = vand.u32 2147483648, %v842_v46  ;;  %v852_v52 = vand.u32 2147483647, %v842_v46  ;;  %vm848_vm11 = vweird.f32 %v842_v46 }
0x1041   :  { %v855_v54 = vor.u32 1.1754944e-38, %v854_v28  ;;  %vm853_vm13 = vcmp.eq.f32.partialorder %v852_v52, 8.507059e+37  ;;  %v967_v28 = vstv %s966_s23 }
0x1045   :  { %v1667_v47 = vpop.eup %1666 }
0x1046   :  { %v844_v49 = vmul.f32 %v1667_v47, %v842_v46  ;;  %vm849_vm10 = vweird.f32 %v1667_v47 }
0x1047   :  { %vm850_vm12 = vmor %vm848_vm11, %vm849_vm10 }
0x1048   :  { %v845_v50 = vsub.f32 1.0, %v844_v49  ;;  %v964_v49 = vstv %s963_s7 }
0x104a   :  { %v846_v51 = vmul.f32 %v1667_v47, %v845_v50 }
0x104c   :  { %v847_v53 = vadd.f32 %v1667_v47, %v846_v51 }
0x104e   :  { %v851_v56 = vsel %vm850_vm12, %v1667_v47, %v847_v53  ;;  %v2126_v47 = vld [vmem:[%s2317_s4 + $0x8] sm:$0x3] }
0x104f   :  { %v856_v61 = vsel %vm853_vm13, %v855_v54, %v851_v56  ;;  %v965_v51 = vmul.f32 %v2126_v47, %v964_v49 }
0x1050   :  { %v862_v63 = vmul.f32 %v860_v60, %v856_v61  ;;  %v869_v7 = vsub.f32 1.0, %v856_v61  ;;  %v875_v9 = vmul.f32 %v856_v61, %v2055_v48 }
0x1052   :  { %864 = vrot.lane.b32.xlu2 %v862_v63, %s1759_s22 }
0x10ac   :  { %v865_v2 = vpop.permute.xlu2 %864 }
0x10ad   :  { %v867_v4 = vadd.f32 %v865_v2, %v824_v39 }
0x10af   :  { %1668 = vtanh.f32 %v867_v4 }
0x10b5   :  { %v1669_v6 = vpop.eup %1668 }
0x10b6   :  { %871 = vrot.lane.b32.xlu0 %v1669_v6, %s1760_s10 }
0x1128   :  { %v872_v8 = vpop.permute.xlu0 %871 }
0x1129   :  { %v874_v10 = vmul.f32 %v872_v8, %v869_v7 }
0x112b   :  { %v2098_v11 = vadd.f32 %v875_v9, %v874_v10 }
0x112d   :  { %v878_v12 = vpack.c.bf16 %v2098_v11, %v2098_v11 }
0x112f   :  { %880 = vrot.lane.b32.xlu1 %v878_v12, %s1760_s10 }
0x11a1   :  { %v881_v18 = vpop.permute.xlu1 %880 }
0x11a2   :  { %1594 = vmatmul.msk.bf16.vlgmr.msra.gmra.mxu2 %vm141_vm0, %v881_v18  ;;  %1600 = vmatmul.msk.bf16.vlgmr.msrb.gmra.mxu1 %vm141_vm0, %v881_v18 }
0x11a3   :  { %1251 = vmatpush.bf16.msra.mxu2 %v1947_v57  ;;  %1371 = vmatpush.bf16.msrb.mxu1 %v1901_v16 }
0x11a7   :  { %1252 = vmatpush.bf16.msra.mxu2 %v1953_v58  ;;  %1372 = vmatpush.bf16.msrb.mxu1 %v1907_v17 }
0x121f   :  { %v1014_v48 = vpop.f32.mrf.mxu1 }
0x1220   :  { %v1015_v16 = vadd.f32 %v1929_v31, %v1014_v48 }
0x1225   :  { %v894_v19 = vpop.f32.mrf.mxu2 }
0x1226   :  { %899 = vrot.lane.b32.xlu0 %v894_v19, %s1760_s10 }
0x1227   :  { %v1016_v22 = vpop.f32.mrf.mxu1 }
0x122d   :  { %v896_v25 = vpop.f32.mrf.mxu2 }
0x1298   :  { %v900_v27 = vpop.permute.xlu0 %899 }
0x1299   :  { %v2111_v29 = vadd.f32 %v900_v27, %v877_v26 }
0x129b   :  { %v905_v30 = vsel %vm360_vm6, %v2111_v29, -inf }
0x129c   :  { %906 = vmax.xlane.f32.xlu2 %v905_v30 }
0x12b4   :  { %1039 = vrot.lane.b32.xlu2 %v1015_v16, %s1759_s22 }
0x130f   :  { %v2117_v17 = vpop.xlane.xlu2 %906 }
0x1310   :  { %vm942_vm14 = vcmp.eq.f32.partialorder %v2111_v29, %v2117_v17 }
0x1311   :  { %v943_v0 = vsel %vm942_vm14, %v1989_v23, 32 }
0x1312   :  { %v944_v32 = vsel %vm360_vm6, %v943_v0, 2147483647 }
0x1313   :  { %v946_v33 = vshra.s32 %v944_v32, 16  ;;  %v945_v35 = vand.u32 65535, %v944_v32 }
0x1315   :  { %v948_v34 = vcvt.s32.f32 %v946_v33  ;;  %v947_v39 = vcvt.s32.f32 %v945_v35 }
0x1317   :  { %949 = vmin.xlane.f32.xlu1 %v948_v34  ;;  %v1040_v25 = vpop.permute.xlu2 %1039 }
0x138a   :  { %v950_v37 = vpop.xlane.xlu1 %949 }
0x138b   :  { %vm951_vm15 = vcmp.eq.f32.partialorder %v948_v34, %v950_v37  ;;  %v956_v42 = vcvt.f32.s32 %v950_v37 }
0x138c   :  { %v952_v40 = vsel %vm951_vm15, %v947_v39, inf }
0x138d   :  { %953 = vmin.xlane.f32.xlu0 %v952_v40  ;;  %v957_v45 = vshll.u32 %v956_v42, 16 }
0x1400   :  { %v954_v43 = vpop.xlane.xlu0 %953 }
0x1401   :  { %v955_v46 = vcvt.f32.s32 %v954_v43 }
0x1403   :  { %v958_v50 = vadd.s32 %v957_v45, %v955_v46 }
0x1405   :  { %vm959_vm1 = vcmp.eq.s32.totalorder %v1977_v15, %v958_v50 }
0x1406   :  { %v1596_v52 = vsel %vm959_vm1, 1.0, %v1762_v44 }
0x1407   :  { %v968_v53 = vmul.f32 %v1596_v52, %v967_v28 }
0x1409   :  { %v969_v54 = vadd.f32 %v968_v53, %v965_v51 }
0x140b   :  { %v970_v56 = vpack.c.bf16 %v969_v54, %v969_v54 }
0x140d   :  { %1598 = vmatmul.msk.bf16.vlgmr.msra.gmra.mxu3 %vm141_vm0, %v970_v56 }
0x140e   :  { %1340 = vmatpush.bf16.msra.mxu3 %v1843_v1 }
0x1412   :  { %1341 = vmatpush.bf16.msra.mxu3 %v1851_v3 }
0x1490   :  { %v983_v60 = vpop.f32.mrf.mxu3 }
0x1491   :  { %v987_v61 = vpack.c.bf16 %v983_v60, %v983_v60 }
0x1493   :  { %1599 = vmatmul.msk.bf16.vlgmr.msra.gmra.mxu0 %vm141_vm0, %v987_v61 }
0x1494   :  { %1357 = vmatpush.bf16.msra.mxu0 %v1860_v5 }
0x1498   :  { %v985_v63 = vpop.f32.mrf.mxu3  ;;  %1358 = vmatpush.bf16.msra.mxu0 %v1887_v14 }
0x1510   :  { %v1000_v2 = vpop.f32.mrf.mxu0 }
0x1511   :  { %v1004_v4 = vadd.f32 %v1000_v2, %v1937_v36  ;;  %v1057_v46 = vadd.f32 %v1000_v2, %v1975_v13 }
0x1513   :  { %v1018_v6 = vadd.f32 %v1015_v16, %v1004_v4 }
0x1515   :  { %v1601_v7 = vmul.f32 -1.442695, %v1018_v6 }
0x1517   :  { %1670 = vpow2.f32 %v1601_v7 }
0x1518   :  { %v1002_v8 = vpop.f32.mrf.mxu0 }
0x1519   :  { %v2167_v8 = vld [vmem:[%s2317_s4 + $0xa] sm:$0x3] }
0x151d   :  { %v1671_v9 = vpop.eup %1670 }
0x151e   :  { %v1022_v1 = vadd.f32 1.0, %v1671_v9 }
0x1520   :  { %1672 = vrcp.f32 %v1022_v1  ;;  %v1034_v18 = vand.u32 2147483648, %v1022_v1  ;;  %v1032_v5 = vand.u32 2147483647, %v1022_v1  ;;  %vm1028_vm3 = vweird.f32 %v1022_v1 }
0x1522   :  { %v1035_v14 = vor.u32 1.1754944e-38, %v1034_v18  ;;  %vm1033_vm5 = vcmp.eq.f32.partialorder %v1032_v5, 8.507059e+37 }
0x1526   :  { %v1673_v3 = vpop.eup %1672 }
0x1527   :  { %v1024_v10 = vmul.f32 %v1673_v3, %v1022_v1  ;;  %vm1029_vm2 = vweird.f32 %v1673_v3  ;;  %v1147_v1 = vstv %s1146_s28 }
0x1528   :  { %vm1030_vm4 = vmor %vm1028_vm3, %vm1029_vm2 }
0x1529   :  { %v1025_v12 = vsub.f32 1.0, %v1024_v10 }
0x152b   :  { %v1026_v48 = vmul.f32 %v1673_v3, %v1025_v12 }
0x152d   :  { %v1027_v19 = vadd.f32 %v1673_v3, %v1026_v48 }
0x152f   :  { %v1031_v22 = vsel %vm1030_vm4, %v1673_v3, %v1027_v19 }
0x1530   :  { %v1036_v26 = vsel %vm1033_vm5, %v1035_v14, %v1031_v22 }
0x1531   :  { %v1042_v27 = vmul.f32 %v1040_v25, %v1036_v26  ;;  %v1049_v32 = vsub.f32 1.0, %v1036_v26  ;;  %v1055_v34 = vmul.f32 %v1036_v26, %v2098_v11 }
0x1533   :  { %1044 = vrot.lane.b32.xlu1 %v1042_v27, %s1759_s22 }
0x15a5   :  { %v1045_v30 = vpop.permute.xlu1 %1044 }
0x15a6   :  { %v1047_v16 = vadd.f32 %v1045_v30, %v1004_v4 }
0x15a8   :  { %1674 = vtanh.f32 %v1047_v16 }
0x15ae   :  { %v1675_v0 = vpop.eup %1674 }
0x15af   :  { %1051 = vrot.lane.b32.xlu0 %v1675_v0, %s1760_s10 }
0x1621   :  { %v1052_v33 = vpop.permute.xlu0 %1051 }
0x1622   :  { %v1054_v35 = vmul.f32 %v1052_v33, %v1049_v32 }
0x1624   :  { %v2141_v37 = vadd.f32 %v1055_v34, %v1054_v35 }
0x1626   :  { %v1058_v39 = vpack.c.bf16 %v2141_v37, %v2141_v37 }
0x1628   :  { %1060 = vrot.lane.b32.xlu2 %v1058_v39, %s1760_s10 }
0x1682   :  { %v1061_v40 = vpop.permute.xlu2 %1060 }
0x1683   :  { %1602 = vmatmul.msk.bf16.vlgmr.msrb.gmra.mxu2 %vm141_vm0, %v1061_v40  ;;  %1608 = vmatmul.msk.bf16.vlgmr.msra.gmra.mxu1 %vm141_vm0, %v1061_v40 }
0x1684   :  { %1431 = vmatpush.bf16.msrb.mxu2 %v1947_v57 }
0x1688   :  { %1432 = vmatpush.bf16.msrb.mxu2 %v1953_v58 }
0x1700   :  { %v1194_v42 = vpop.f32.mrf.mxu1 }
0x1701   :  { %v1195_v54 = vadd.f32 %v1929_v31, %v1194_v42  ;;  %v1144_v31 = vstv %s1143_s27 }
0x1702   :  { %v1145_v3 = vmul.f32 %v2167_v8, %v1144_v31 }
0x1706   :  { %v1074_v43 = vpop.f32.mrf.mxu2 }
0x1707   :  { %1079 = vrot.lane.b32.xlu0 %v1074_v43, %s1760_s10 }
0x1708   :  { %v1196_v11 = vpop.f32.mrf.mxu1 }
0x170e   :  { %v1076_v45 = vpop.f32.mrf.mxu2 }
0x1779   :  { %v1080_v49 = vpop.permute.xlu0 %1079 }
0x177a   :  { %v2152_v50 = vadd.f32 %v1080_v49, %v1057_v46 }
0x177c   :  { %v1085_v28 = vsel %vm360_vm6, %v2152_v50, -inf }
0x177d   :  { %1086 = vmax.xlane.f32.xlu1 %v1085_v28 }
0x17f0   :  { %v2156_v51 = vpop.xlane.xlu1 %1086 }
0x17f1   :  { %vm1122_vm7 = vcmp.eq.f32.partialorder %v2152_v50, %v2156_v51 }
0x17f2   :  { %v1123_v57 = vsel %vm1122_vm7, %v1989_v23, 32  ;;  %vm371_vm7 = vcmask 254976  }
0x17f3   :  { %v1124_v58 = vsel %vm360_vm6, %v1123_v57, 2147483647 }
0x17f4   :  { %v1126_v52 = vshra.s32 %v1124_v58, 16  ;;  %v1125_v56 = vand.u32 65535, %v1124_v58 }
0x17f6   :  { %v1128_v53 = vcvt.s32.f32 %v1126_v52  ;;  %v1127_v61 = vcvt.s32.f32 %v1125_v56 }
0x17f8   :  { %1129 = vmin.xlane.f32.xlu2 %v1128_v53 }
0x1810   :  { %1219 = vrot.lane.b32.xlu2 %v1195_v54, %s1759_s22 }
0x186b   :  { %v1130_v60 = vpop.xlane.xlu2 %1129 }
0x186c   :  { %vm1131_vm8 = vcmp.eq.f32.partialorder %v1128_v53, %v1130_v60  ;;  %v1136_v2 = vcvt.f32.s32 %v1130_v60 }
0x186d   :  { %v1132_v63 = vsel %vm1131_vm8, %v1127_v61, inf }
0x186e   :  { %1133 = vmin.xlane.f32.xlu0 %v1132_v63  ;;  %v1137_v6 = vshll.u32 %v1136_v2, 16 }
0x1873   :  { %v1220_v45 = vpop.permute.xlu2 %1219 }
0x18e1   :  { %v1134_v4 = vpop.xlane.xlu0 %1133 }
0x18e2   :  { %v1135_v7 = vcvt.f32.s32 %v1134_v4 }
0x18e4   :  { %v1138_v9 = vadd.s32 %v1137_v6, %v1135_v7 }
0x18e6   :  { %vm1139_vm9 = vcmp.eq.s32.totalorder %v1977_v15, %v1138_v9 }
0x18e7   :  { %v1604_v10 = vsel %vm1139_vm9, 1.0, %v1762_v44 }
0x18e8   :  { %v1148_v12 = vmul.f32 %v1604_v10, %v1147_v1 }
0x18ea   :  { %v1149_v18 = vadd.f32 %v1148_v12, %v1145_v3  ;;  %v1716_v3 = vld [vmem:[%s2324_s11] ss:$0 sm:$0xff]  ;;  %s1613_s11 = sld [smem:[#allocation3 + $0x5]] }
0x18ec   :  { %v1150_v48 = vpack.c.bf16 %v1149_v18, %v1149_v18 }
0x18ee   :  { %1606 = vmatmul.msk.bf16.vlgmr.msrb.gmra.mxu3 %vm141_vm0, %v1150_v48 }
0x18f0   :  { %s1323_s14 = scvt.s32.f32 %s1613_s11 }
0x18f2   :  { %s1326_s15 = ssub.f32 1.0, %s1323_s14 }
0x1971   :  { %v1163_v5 = vpop.f32.mrf.mxu3 }
0x1972   :  { %v1167_v19 = vpack.c.bf16 %v1163_v5, %v1163_v5 }
0x1974   :  { %1607 = vmatmul.msk.bf16.vlgmr.msrb.gmra.mxu0 %vm141_vm0, %v1167_v19 }
0x1979   :  { %v1165_v14 = vpop.f32.mrf.mxu3 }
0x19f1   :  { %v1180_v22 = vpop.f32.mrf.mxu0 }
0x19f2   :  { %v1184_v25 = vadd.f32 %v1180_v22, %v1937_v36 }
0x19f4   :  { %v1198_v26 = vadd.f32 %v1195_v54, %v1184_v25 }
0x19f6   :  { %v1609_v27 = vmul.f32 -1.442695, %v1198_v26 }
0x19f8   :  { %1676 = vpow2.f32 %v1609_v27 }
0x19f9   :  { %v1182_v30 = vpop.f32.mrf.mxu0 }
0x19fe   :  { %v1677_v16 = vpop.eup %1676 }
0x19ff   :  { %v1202_v0 = vadd.f32 1.0, %v1677_v16 }
0x1a01   :  { %1678 = vrcp.f32 %v1202_v0  ;;  %v1214_v35 = vand.u32 2147483648, %v1202_v0  ;;  %v1212_v40 = vand.u32 2147483647, %v1202_v0  ;;  %vm1208_vm11 = vweird.f32 %v1202_v0 }
0x1a03   :  { %v1215_v43 = vor.u32 1.1754944e-38, %v1214_v35  ;;  %vm1213_vm13 = vcmp.eq.f32.partialorder %v1212_v40, 8.507059e+37 }
0x1a07   :  { %v1679_v32 = vpop.eup %1678 }
0x1a08   :  { %v1204_v33 = vmul.f32 %v1679_v32, %v1202_v0  ;;  %vm1209_vm10 = vweird.f32 %v1679_v32 }
0x1a09   :  { %vm1210_vm12 = vmor %vm1208_vm11, %vm1209_vm10 }
0x1a0a   :  { %v1205_v34 = vsub.f32 1.0, %v1204_v33 }
0x1a0c   :  { %v1206_v39 = vmul.f32 %v1679_v32, %v1205_v34  ;;  %v1327_v34 = vstv %s1326_s15 }
0x1a0e   :  { %v1207_v42 = vadd.f32 %v1679_v32, %v1206_v39 }
0x1a10   :  { %v1211_v11 = vsel %vm1210_vm12, %v1679_v32, %v1207_v42  ;;  %v1324_v32 = vstv %s1323_s14 }
0x1a11   :  { %v1216_v46 = vsel %vm1213_vm13, %v1215_v43, %v1211_v11 }
0x1a12   :  { %v1222_v49 = vmul.f32 %v1220_v45, %v1216_v46  ;;  %v1229_v52 = vsub.f32 1.0, %v1216_v46  ;;  %v1235_v54 = vmul.f32 %v1216_v46, %v2141_v37  ;;  %v1237_v37 = vadd.f32 %v1180_v22, %v1975_v13 }
0x1a14   :  { %1224 = vrot.lane.b32.xlu1 %v1222_v49, %s1759_s22 }
0x1a86   :  { %v1225_v28 = vpop.permute.xlu1 %1224 }
0x1a87   :  { %v1227_v57 = vadd.f32 %v1225_v28, %v1184_v25 }
0x1a89   :  { %1680 = vtanh.f32 %v1227_v57 }
0x1a8f   :  { %v1681_v58 = vpop.eup %1680 }
0x1a90   :  { %1231 = vrot.lane.b32.xlu0 %v1681_v58, %s1760_s10 }
0x1b02   :  { %v1232_v53 = vpop.permute.xlu0 %1231 }
0x1b03   :  { %v1234_v56 = vmul.f32 %v1232_v53, %v1229_v52 }
0x1b05   :  { %v2178_v60 = vadd.f32 %v1235_v54, %v1234_v56 }
0x1b07   :  { %v1238_v61 = vpack.c.bf16 %v2178_v60, %v2178_v60 }
0x1b09   :  { %1240 = vrot.lane.b32.xlu2 %v1238_v61, %s1760_s10 }
0x1b63   :  { %v1241_v63 = vpop.permute.xlu2 %1240 }
0x1b64   :  { %1610 = vmatmul.msk.bf16.vlgmr.msra.gmra.mxu2 %vm141_vm0, %v1241_v63  ;;  %1616 = vmatmul.msk.bf16.vlgmr.msrb.gmra.mxu1 %vm141_vm0, %v1241_v63 }
0x1be1   :  { %v1374_v2 = vpop.f32.mrf.mxu1 }
0x1be2   :  { %v1375_v10 = vadd.f32 %v1716_v3, %v1374_v2 }
0x1be7   :  { %v1254_v4 = vpop.f32.mrf.mxu2 }
0x1be8   :  { %1259 = vrot.lane.b32.xlu0 %v1254_v4, %s1760_s10 }
0x1be9   :  { %v1376_v6 = vpop.f32.mrf.mxu1 }
0x1bef   :  { %v1256_v7 = vpop.f32.mrf.mxu2 }
0x1c5a   :  { %v1260_v31 = vpop.permute.xlu0 %1259 }
0x1c5b   :  { %v2187_v9 = vadd.f32 %v1260_v31, %v1237_v37 }
0x1c5d   :  { %v1265_v1 = vsel %vm360_vm6, %v2187_v9, -inf }
0x1c5e   :  { %1266 = vmax.xlane.f32.xlu1 %v1265_v1 }
0x1c77   :  { %1399 = vrot.lane.b32.xlu1 %v1375_v10, %s1759_s22 }
0x1cd1   :  { %v2195_v12 = vpop.xlane.xlu1 %1266 }
0x1cd2   :  { %vm1302_vm14 = vcmp.eq.f32.partialorder %v2187_v9, %v2195_v12 }
0x1cd3   :  { %v1303_v18 = vsel %vm1302_vm14, %v1989_v23, 32  ;;  %v2204_v23 = vld [vmem:[%s2317_s4 + $0xc] sm:$0x3] }
0x1cd4   :  { %v1304_v48 = vsel %vm360_vm6, %v1303_v18, 2147483647  ;;  %v1325_v35 = vmul.f32 %v2204_v23, %v1324_v32  ;;  %v728_v32 = vsub.f32 %v2068_v59, %v2074_v62 }
0x1cd5   :  { %v1306_v5 = vshra.s32 %v1304_v48, 16  ;;  %v1305_v14 = vand.u32 65535, %v1304_v48 }
0x1cd7   :  { %v1308_v19 = vcvt.s32.f32 %v1306_v5  ;;  %v1307_v25 = vcvt.s32.f32 %v1305_v14 }
0x1cd9   :  { %1309 = vmin.xlane.f32.xlu2 %v1308_v19 }
0x1d4c   :  { %v1310_v22 = vpop.xlane.xlu2 %1309 }
0x1d4d   :  { %vm1311_vm15 = vcmp.eq.f32.partialorder %v1308_v19, %v1310_v22  ;;  %v1316_v27 = vcvt.f32.s32 %v1310_v22 }
0x1d4e   :  { %v1312_v26 = vsel %vm1311_vm15, %v1307_v25, inf }
0x1d4f   :  { %1313 = vmin.xlane.f32.xlu0 %v1312_v26  ;;  %v1317_v16 = vshll.u32 %v1316_v27, 16 }
0x1dc2   :  { %v1314_v30 = vpop.xlane.xlu0 %1313 }
0x1dc3   :  { %v1315_v0 = vcvt.f32.s32 %v1314_v30 }
0x1dc5   :  { %v1318_v33 = vadd.s32 %v1317_v16, %v1315_v0  ;;  %v1717_v0 = vld [vmem:[%s2317_s4 + $0x2] sm:$0x3] }
0x1dc7   :  { %vm1319_vm1 = vcmp.eq.s32.totalorder %v1977_v15, %v1318_v33 }
0x1dc8   :  { %v1612_v39 = vsel %vm1319_vm1, 1.0, %v1762_v44 }
0x1dc9   :  { %v1328_v40 = vmul.f32 %v1612_v39, %v1327_v34 }
0x1dcb   :  { %v1329_v42 = vadd.f32 %v1328_v40, %v1325_v35  ;;  %v548_v35 = vsub.f32 %v2025_v38, %v2031_v41 }
0x1dcd   :  { %v1330_v43 = vpack.c.bf16 %v1329_v42, %v1329_v42  ;;  %v549_v39 = vmul.f32 1.442695, %v548_v35 }
0x1dcf   :  { %1614 = vmatmul.msk.bf16.vlgmr.msra.gmra.mxu3 %vm141_vm0, %v1330_v43 }
0x1e52   :  { %v1343_v11 = vpop.f32.mrf.mxu3 }
0x1e53   :  { %v1347_v45 = vpack.c.bf16 %v1343_v11, %v1343_v11 }
0x1e55   :  { %1615 = vmatmul.msk.bf16.vlgmr.msra.gmra.mxu0 %vm141_vm0, %v1347_v45 }
0x1e5a   :  { %v1345_v46 = vpop.f32.mrf.mxu3 }
0x1ed2   :  { %v2211_v49 = vpop.f32.mrf.mxu0 }
0x1ed3   :  { %v1364_v28 = vadd.f32 %v2211_v49, %v1937_v36  ;;  %v1400_v36 = vpop.permute.xlu1 %1399 }
0x1ed5   :  { %v1378_v57 = vadd.f32 %v1375_v10, %v1364_v28  ;;  %v364_v10 = vsub.f32 %v1983_v20, %v1991_v24 }
0x1ed7   :  { %v1617_v58 = vmul.f32 -1.442695, %v1378_v57  ;;  %v365_v18 = vmul.f32 1.442695, %v364_v10 }
0x1ed9   :  { %1682 = vpow2.f32 %v1617_v58 }
0x1eda   :  { %v1362_v15 = vpop.f32.mrf.mxu0 }
0x1edf   :  { %v1683_v44 = vpop.eup %1682 }
0x1ee0   :  { %v1382_v52 = vadd.f32 1.0, %v1683_v44  ;;  %v908_v44 = vsub.f32 %v2111_v29, %v2117_v17 }
0x1ee2   :  { %1684 = vrcp.f32 %v1382_v52  ;;  %v1394_v61 = vand.u32 2147483648, %v1382_v52  ;;  %v1392_v2 = vand.u32 2147483647, %v1382_v52  ;;  %vm1388_vm3 = vweird.f32 %v1382_v52 }
0x1ee4   :  { %v1395_v6 = vor.u32 1.1754944e-38, %v1394_v61  ;;  %vm1393_vm5 = vcmp.eq.f32.partialorder %v1392_v2, 8.507059e+37  ;;  %v1088_v2 = vsub.f32 %v2152_v50, %v2156_v51 }
0x1ee8   :  { %v1685_v53 = vpop.eup %1684 }
0x1ee9   :  { %v1384_v54 = vmul.f32 %v1685_v53, %v1382_v52  ;;  %vm1389_vm2 = vweird.f32 %v1685_v53 }
0x1eea   :  { %vm1390_vm4 = vmor %vm1388_vm3, %vm1389_vm2 }
0x1eeb   :  { %v1385_v56 = vsub.f32 1.0, %v1384_v54 }
0x1eed   :  { %v1386_v63 = vmul.f32 %v1685_v53, %v1385_v56 }
0x1eef   :  { %v1387_v4 = vadd.f32 %v1685_v53, %v1386_v63 }
0x1ef1   :  { %v1391_v7 = vsel %vm1390_vm4, %v1685_v53, %v1387_v4  ;;  %v909_v53 = vmul.f32 1.442695, %v908_v44 }
0x1ef2   :  { %v1396_v37 = vsel %vm1393_vm5, %v1395_v6, %v1391_v7 }
0x1ef3   :  { %v1402_v31 = vmul.f32 %v1400_v36, %v1396_v37  ;;  %v1409_v19 = vsub.f32 1.0, %v1396_v37  ;;  %v1415_v22 = vmul.f32 %v1396_v37, %v2178_v60  ;;  %v729_v60 = vmul.f32 1.442695, %v728_v32 }
0x1ef5   :  { %1404 = vrot.lane.b32.xlu2 %v1402_v31, %s1759_s22 }
0x1f4f   :  { %v1405_v1 = vpop.permute.xlu2 %1404 }
0x1f50   :  { %v1407_v3 = vadd.f32 %v1405_v1, %v1364_v28  ;;  %v1619_v1 = vld [vmem:[%s2317_s4 + $0xe] sm:$0x3]  ;;  %s1763_s4 = smov [#allocation4]  }
0x1f52   :  { %1686 = vtanh.f32 %v1407_v3 }
0x1f53   :  { %1688 = vpow2.f32 %v365_v18 }
0x1f54   :  { %1690 = vpow2.f32 %v729_v60 }
0x1f55   :  { %1692 = vpow2.f32 %v549_v39 }
0x1f56   :  { %1694 = vpow2.f32 %v909_v53 }
0x1f58   :  { %v1687_v48 = vpop.eup %1686 }
0x1f59   :  { %1411 = vrot.lane.b32.xlu0 %v1687_v48, %s1760_s10  ;;  %v1689_v5 = vpop.eup %1688 }
0x1f5a   :  { %v1691_v33 = vpop.eup %1690 }
0x1f61   :  { %368 = vrot.lane.b32.xlu0 %v1689_v5, %s1761_s5 }
0x1fcb   :  { %v1412_v14 = vpop.permute.xlu0 %1411 }
0x1fcc   :  { %v1414_v25 = vmul.f32 %v1412_v14, %v1409_v19 }
0x1fce   :  { %v1416_v26 = vadd.f32 %v1415_v22, %v1414_v25 }
0x1fd0   :  { %v1418_v27 = vpack.c.bf16 %v1416_v26, %v1416_v26 }
0x1fd2   :  { %1420 = vrot.lane.b32.xlu1 %v1418_v27, %s1760_s10 }
0x1fd3   :  { %v369_v30 = vpop.permute.xlu0 %368 }
0x1fd4   :  { %v372_v16 = vsel %vm371_vm7, %v369_v30, 0.0 }
0x1fd5   :  { %373 = vadd.xlane.f32.xlu2 %v372_v16 }
0x1fda   :  { %379 = vrot.lane.b32.xlu1 %v1717_v0, %s1760_s10 }
0x1fed   :  { %562 = vrot.lane.b32.xlu2 %v2040_v55, %s1760_s10  ;;  %v1693_v55 = vpop.eup %1692 }
0x1fee   :  { %v1695_v56 = vpop.eup %1694 }
0x1ff5   :  { %732 = vrot.lane.b32.xlu2 %v1691_v33, %s1761_s5 }
0x1ffd   :  { %742 = vrot.lane.b32.xlu2 %v2083_v21, %s1760_s10 }
0x2044   :  { %v1421_v34 = vpop.permute.xlu1 %1420 }
0x2045   :  { %1618 = vmatmul.msk.bf16.vlgmr.msrb.gmra.mxu2 %vm141_vm0, %v1421_v34  ;;  %vm391_vm0 = vcmask 1041408  }
0x2048   :  { %v374_v43 = vpop.xlane.xlu2 %373 }
0x2049   :  { %1696 = vlog2.f32 %v374_v43 }
0x204c   :  { %v380_v40 = vpop.permute.xlu1 %379 }
0x204d   :  { %v382_v42 = vmul.f32 %v380_v40, %v1983_v20 }
0x204f   :  { %384 = vrot.lane.b32.xlu0 %v382_v42, %s1761_s5  ;;  %v1697_v7 = vpop.eup %1696 }
0x2050   :  { %v563_v57 = vpop.permute.xlu2 %562 }
0x2051   :  { %v565_v15 = vmul.f32 %v563_v57, %v2025_v38 }
0x2057   :  { %552 = vrot.lane.b32.xlu0 %v1693_v55, %s1761_s5 }
0x2058   :  { %v733_v58 = vpop.permute.xlu2 %732 }
0x2059   :  { %v735_v10 = vsel %vm371_vm7, %v733_v58, 0.0 }
0x2060   :  { %v743_v52 = vpop.permute.xlu2 %742 }
0x2061   :  { %v745_v54 = vmul.f32 %v743_v52, %v2068_v59  ;;  %v1089_v59 = vmul.f32 1.442695, %v1088_v2 }
0x2063   :  { %1698 = vpow2.f32 %v1089_v59 }
0x20c1   :  { %v385_v11 = vpop.permute.xlu0 %384 }
0x20c2   :  { %v387_v21 = vsel %vm371_vm7, %v385_v11, 0.0 }
0x20c3   :  { %388 = vadd.xlane.f32.xlu1 %v387_v21 }
0x20c8   :  { %v1434_v45 = vpop.f32.mrf.mxu2 }
0x20c9   :  { %1439 = vrot.lane.b32.xlu2 %v1434_v45, %s1760_s10  ;;  %v553_v46 = vpop.permute.xlu0 %552 }
0x20ca   :  { %v555_v28 = vsel %vm371_vm7, %v553_v46, 0.0 }
0x20cb   :  { %556 = vadd.xlane.f32.xlu0 %v555_v28 }
0x20d0   :  { %v1436_v20 = vpop.f32.mrf.mxu2 }
0x20d1   :  { %922 = vrot.lane.b32.xlu2 %v2126_v47, %s1760_s10  ;;  %v1417_v47 = vadd.f32 %v2211_v49, %v1975_v13  ;;  %v376_v13 = vmul.f32 0.6931472, %v1697_v7  ;;  %v1699_v49 = vpop.eup %1698 }
0x20d3   :  { %v377_v36 = vadd.f32 %v376_v13, %v1991_v24 }
0x20dc   :  { %567 = vrot.lane.b32.xlu1 %v565_v15, %s1761_s5 }
0x20e4   :  { %747 = vrot.lane.b32.xlu1 %v745_v54, %s1761_s5 }
0x20ec   :  { %912 = vrot.lane.b32.xlu1 %v1695_v56, %s1761_s5 }
0x2123   :  { %v1440_v61 = vpop.permute.xlu2 %1439 }
0x2124   :  { %v2254_v38 = vadd.f32 %v1440_v61, %v1417_v47 }
0x2126   :  { %v1445_v63 = vsel %vm360_vm6, %v2254_v38, -inf  ;;  %vm1483_vm6 = vcmask 0  }
0x2127   :  { %1446 = vmax.xlane.f32.xlu2 %v1445_v63 }
0x212b   :  { %v923_v4 = vpop.permute.xlu2 %922 }
0x212c   :  { %v925_v6 = vmul.f32 %v923_v4, %v2111_v29 }
0x212e   :  { %927 = vrot.lane.b32.xlu1 %v925_v6, %s1761_s5 }
0x2136   :  { %1092 = vrot.lane.b32.xlu1 %v1699_v49, %s1761_s5  ;;  %v389_v37 = vpop.xlane.xlu1 %388 }
0x2137   :  { %v390_v31 = vsub.f32 %v377_v36, %v389_v37 }
0x2139   :  { %v392_v32 = vsel %vm391_vm0, %v390_v31, 0.0 }
0x213a   :  { %v393_v33 = vrot.slane %v392_v32, 4 }
0x213c   :  { %v394_v35 = vadd.f32 %v393_v33, %v392_v32 }
0x213e   :  { %1282 = vrot.lane.b32.xlu1 %v2204_v23, %s1760_s10  ;;  %v557_v0 = vpop.xlane.xlu0 %556  ;;  %v395_v55 = vrot.slane %v394_v35, 2 }
0x2140   :  { %v396_v21 = vadd.f32 %v395_v55, %v394_v35 }
0x2146   :  { %1462 = vrot.lane.b32.xlu1 %v1619_v1, %s1760_s10 }
0x214e   :  { %v568_v29 = vpop.permute.xlu1 %567 }
0x214f   :  { %v570_v3 = vsel %vm371_vm7, %v568_v29, 0.0 }
0x2150   :  { %571 = vadd.xlane.f32.xlu0 %v570_v3 }
0x2156   :  { %v748_v24 = vpop.permute.xlu1 %747 }
0x2157   :  { %v750_v18 = vsel %vm371_vm7, %v748_v24, 0.0 }
0x2158   :  { %736 = vadd.xlane.f32.xlu0 %v735_v10 }
0x215e   :  { %v913_v48 = vpop.permute.xlu1 %912 }
0x215f   :  { %v915_v23 = vsel %vm371_vm7, %v913_v48, 0.0 }
0x2160   :  { %751 = vadd.xlane.f32.xlu0 %v750_v18 }
0x2168   :  { %916 = vadd.xlane.f32.xlu0 %v915_v23 }
0x219a   :  { %v2274_v5 = vpop.xlane.xlu2 %1446 }
0x219b   :  { %v1448_v19 = vsub.f32 %v2254_v38, %v2274_v5 }
0x219d   :  { %v1449_v14 = vmul.f32 1.442695, %v1448_v19 }
0x219f   :  { %1700 = vpow2.f32 %v1449_v14 }
0x21a0   :  { %v928_v22 = vpop.permute.xlu1 %927  ;;  %1702 = vlog2.f32 %v557_v0 }
0x21a1   :  { %v930_v25 = vsel %vm371_vm7, %v928_v22, 0.0 }
0x21a2   :  { %931 = vadd.xlane.f32.xlu0 %v930_v25 }
0x21a5   :  { %v1701_v26 = vpop.eup %1700 }
0x21a6   :  { %1452 = vrot.lane.b32.xlu2 %v1701_v26, %s1761_s5  ;;  %v1703_v60 = vpop.eup %1702  ;;  %v1268_v26 = vsub.f32 %v2187_v9, %v2195_v12 }
0x21a7   :  { %v559_v34 = vmul.f32 0.6931472, %v1703_v60 }
0x21a8   :  { %v1093_v27 = vpop.permute.xlu1 %1092 }
0x21a9   :  { %v560_v39 = vadd.f32 %v559_v34, %v2031_v41  ;;  %v1095_v59 = vsel %vm371_vm7, %v1093_v27, 0.0 }
0x21b0   :  { %v1283_v30 = vpop.permute.xlu1 %1282 }
0x21b1   :  { %v1285_v16 = vmul.f32 %v1283_v30, %v2187_v9  ;;  %v1269_v30 = vmul.f32 1.442695, %v1268_v26 }
0x21b3   :  { %1287 = vrot.lane.b32.xlu2 %v1285_v16, %s1761_s5 }
0x21b6   :  { %1102 = vrot.lane.b32.xlu0 %v2167_v8, %s1760_s10  ;;  %v397_v8 = vrot.slane %v396_v21, 1  ;;  %s1490_s10 = sshll.u32 %s1763_s4, 4  ;;  %s1491_s10 = int_to_ptr.vmem [resolvable:$true] %s1490_s10 }
0x21b8   :  { %v398_v58 = vadd.f32 %v397_v8, %v396_v21  ;;  %v1463_v49 = vpop.permute.xlu1 %1462 }
0x21b9   :  { %v1465_v36 = vmul.f32 %v1463_v49, %v2254_v38 }
0x21c3   :  { %v572_v40 = vpop.xlane.xlu0 %571 }
0x21c4   :  { %v573_v42 = vsub.f32 %v560_v39, %v572_v40 }
0x21c6   :  { %v574_v43 = vsel %vm391_vm0, %v573_v42, 0.0 }
0x21c7   :  { %v575_v11 = vrot.slane %v574_v43, 4 }
0x21c9   :  { %v576_v45 = vadd.f32 %v575_v11, %v574_v43 }
0x21cb   :  { %v577_v46 = vrot.slane %v576_v45, 2  ;;  %v737_v28 = vpop.xlane.xlu0 %736 }
0x21cc   :  { %1704 = vlog2.f32 %v737_v28 }
0x21cd   :  { %v578_v57 = vadd.f32 %v577_v46, %v576_v45 }
0x21cf   :  { %v579_v20 = vrot.slane %v578_v57, 1 }
0x21d1   :  { %v580_v15 = vadd.f32 %v579_v20, %v578_v57 }
0x21d2   :  { %v1705_v44 = vpop.eup %1704 }
0x21d3   :  { %v581_v52 = vadd.f32 %v580_v15, %v398_v58  ;;  %v739_v53 = vmul.f32 0.6931472, %v1705_v44  ;;  %v752_v54 = vpop.xlane.xlu0 %751 }
0x21d5   :  { %v740_v41 = vadd.f32 %v739_v53, %v2074_v62 }
0x21d7   :  { %v753_v56 = vsub.f32 %v740_v41, %v752_v54 }
0x21d9   :  { %v754_v47 = vsel %vm391_vm0, %v753_v56, 0.0 }
0x21da   :  { %v755_v61 = vrot.slane %v754_v47, 4 }
0x21db   :  { %v917_v62 = vpop.xlane.xlu0 %916 }
0x21dc   :  { %v756_v63 = vadd.f32 %v755_v61, %v754_v47  ;;  %1706 = vlog2.f32 %v917_v62 }
0x21dd   :  { %1708 = vpow2.f32 %v1269_v30 }
0x21de   :  { %v757_v2 = vrot.slane %v756_v63, 2 }
0x21e0   :  { %v758_v4 = vadd.f32 %v757_v2, %v756_v63  ;;  %1096 = vadd.xlane.f32.xlu0 %v1095_v59 }
0x21e2   :  { %v759_v6 = vrot.slane %v758_v4, 1  ;;  %v1707_v37 = vpop.eup %1706 }
0x21e3   :  { %v919_v31 = vmul.f32 0.6931472, %v1707_v37  ;;  %v1709_v0 = vpop.eup %1708 }
0x21e4   :  { %v760_v7 = vadd.f32 %v759_v6, %v758_v4 }
0x21e5   :  { %v920_v29 = vadd.f32 %v919_v31, %v2117_v17 }
0x21e6   :  { %v761_v13 = vadd.f32 %v760_v7, %v581_v52 }
0x21f4   :  { %1467 = vrot.lane.b32.xlu0 %v1465_v36, %s1761_s5 }
0x2200   :  { %v1453_v1 = vpop.permute.xlu2 %1452 }
0x2201   :  { %v1455_v35 = vsel %vm371_vm7, %v1453_v1, 0.0 }
0x220d   :  { %v1288_v48 = vpop.permute.xlu2 %1287 }
0x220e   :  { %v1290_v14 = vsel %vm371_vm7, %v1288_v48, 0.0 }
0x2215   :  { %v932_v3 = vpop.xlane.xlu0 %931 }
0x2216   :  { %v933_v10 = vsub.f32 %v920_v29, %v932_v3 }
0x2218   :  { %v934_v24 = vsel %vm391_vm0, %v933_v10, 0.0 }
0x2219   :  { %v935_v18 = vrot.slane %v934_v24, 4 }
0x221b   :  { %v936_v23 = vadd.f32 %v935_v18, %v934_v24 }
0x221d   :  { %v937_v19 = vrot.slane %v936_v23, 2 }
0x221e   :  { %1291 = vadd.xlane.f32.xlu0 %v1290_v14 }
0x221f   :  { %v938_v38 = vadd.f32 %v937_v19, %v936_v23 }
0x2221   :  { %v939_v22 = vrot.slane %v938_v38, 1 }
0x2223   :  { %v940_v25 = vadd.f32 %v939_v22, %v938_v38 }
0x2225   :  { %v941_v27 = vadd.f32 %v940_v25, %v761_v13 }
0x2228   :  { %v1103_v17 = vpop.permute.xlu0 %1102 }
0x2229   :  { %v1105_v16 = vmul.f32 %v1103_v17, %v2152_v50 }
0x222b   :  { %1107 = vrot.lane.b32.xlu1 %v1105_v16, %s1761_s5 }
0x2233   :  { %1272 = vrot.lane.b32.xlu1 %v1709_v0, %s1761_s5 }
0x2253   :  { %v1097_v33 = vpop.xlane.xlu0 %1096 }
0x2254   :  { %1710 = vlog2.f32 %v1097_v33 }
0x225a   :  { %v1711_v40 = vpop.eup %1710 }
0x225b   :  { %v1099_v42 = vmul.f32 0.6931472, %v1711_v40 }
0x225d   :  { %v1100_v55 = vadd.f32 %v1099_v42, %v2156_v51 }
0x2266   :  { %v1468_v39 = vpop.permute.xlu0 %1467 }
0x2267   :  { %v1470_v50 = vsel %vm371_vm7, %v1468_v39, 0.0 }
0x2291   :  { %v1292_v56 = vpop.xlane.xlu0 %1291 }
0x229d   :  { %v1108_v32 = vpop.permute.xlu1 %1107 }
0x229e   :  { %v1110_v60 = vsel %vm371_vm7, %v1108_v32, 0.0 }
0x229f   :  { %1111 = vadd.xlane.f32.xlu1 %v1110_v60 }
0x22a5   :  { %v1273_v34 = vpop.permute.xlu1 %1272 }
0x22a6   :  { %v1275_v9 = vsel %vm371_vm7, %v1273_v34, 0.0 }
0x22a7   :  { %1456 = vadd.xlane.f32.xlu1 %v1455_v35  ;;  %1276 = vadd.xlane.f32.xlu2 %v1275_v9 }
0x22af   :  { %1471 = vadd.xlane.f32.xlu1 %v1470_v50 }
0x2312   :  { %v1112_v43 = vpop.xlane.xlu1 %1111 }
0x2313   :  { %v1113_v11 = vsub.f32 %v1100_v55, %v1112_v43 }
0x2315   :  { %v1114_v21 = vsel %vm391_vm0, %v1113_v11, 0.0 }
0x2316   :  { %v1115_v45 = vrot.slane %v1114_v21, 4 }
0x2318   :  { %v1116_v46 = vadd.f32 %v1115_v45, %v1114_v21 }
0x231a   :  { %v1117_v28 = vrot.slane %v1116_v46, 2  ;;  %v1277_v8 = vpop.xlane.xlu2 %1276  ;;  %v1457_v57 = vpop.xlane.xlu1 %1456 }
0x231b   :  { %1712 = vlog2.f32 %v1277_v8 }
0x231c   :  { %v1118_v20 = vadd.f32 %v1117_v28, %v1116_v46  ;;  %1714 = vlog2.f32 %v1457_v57 }
0x231e   :  { %v1119_v58 = vrot.slane %v1118_v20, 1 }
0x2320   :  { %v1120_v15 = vadd.f32 %v1119_v58, %v1118_v20 }
0x2321   :  { %v1713_v44 = vpop.eup %1712 }
0x2322   :  { %v1715_v52 = vpop.eup %1714  ;;  %v1121_v53 = vadd.f32 %v1120_v15, %v941_v27  ;;  %v1279_v41 = vmul.f32 0.6931472, %v1713_v44  ;;  %v1472_v63 = vpop.xlane.xlu1 %1471 }
0x2323   :  { %v1459_v54 = vmul.f32 0.6931472, %v1715_v52 }
0x2324   :  { %v1280_v51 = vadd.f32 %v1279_v41, %v2195_v12 }
0x2325   :  { %v1460_v47 = vadd.f32 %v1459_v54, %v2274_v5 }
0x2326   :  { %v1293_v61 = vsub.f32 %v1280_v51, %v1292_v56 }
0x2327   :  { %v1473_v2 = vsub.f32 %v1460_v47, %v1472_v63 }
0x2328   :  { %v1294_v59 = vsel %vm391_vm0, %v1293_v61, 0.0 }
0x2329   :  { %v1295_v4 = vrot.slane %v1294_v59, 4  ;;  %v1474_v6 = vsel %vm391_vm0, %v1473_v2, 0.0 }
0x232a   :  { %v1475_v7 = vrot.slane %v1474_v6, 4 }
0x232b   :  { %v1296_v13 = vadd.f32 %v1295_v4, %v1294_v59 }
0x232c   :  { %v1476_v49 = vadd.f32 %v1475_v7, %v1474_v6 }
0x232d   :  { %v1297_v36 = vrot.slane %v1296_v13, 2 }
0x232e   :  { %v1477_v62 = vrot.slane %v1476_v49, 2 }
0x232f   :  { %v1298_v37 = vadd.f32 %v1297_v36, %v1296_v13 }
0x2330   :  { %v1478_v31 = vadd.f32 %v1477_v62, %v1476_v49 }
0x2331   :  { %v1299_v1 = vrot.slane %v1298_v37, 1 }
0x2332   :  { %v1479_v12 = vrot.slane %v1478_v31, 1 }
0x2333   :  { %v1300_v29 = vadd.f32 %v1299_v1, %v1298_v37 }
0x2334   :  { %v1480_v3 = vadd.f32 %v1479_v12, %v1478_v31 }
0x2335   :  { %v1301_v5 = vadd.f32 %v1300_v29, %v1121_v53 }
0x2337   :  { %v1481_v10 = vadd.f32 %v1480_v3, %v1301_v5 }
0x2339   :  { %v1482_v24 = vmul.f32 0.071428575, %v1481_v10 }
0x233b   :  { %1484 = vst.msk [vmem:[#allocation4] sm:$0x1] %vm1483_vm6, %v1482_v24 }
0x233c   :  { %1495 = dma.vmem_to_hbm [thread:$0]  %s1491_s10, 16, %s1493_s18, [#allocation5]  }
0x233d   :  { %1756 = dma.done.wait [#allocation5], 16  }
0x233e   :  { %1757 = vsyncadd [#allocation5], 4294967280 }
0x233f   :  { %1500 = vsyncpa [#allocation5], 1 }

</bundles_post_ra>
